<compile_context>
chip_gen: v5e
topology: v5e:2x2
jax: 0.10.0
libtpu: 0.0.40
codegen_flags: <defaults>
</compile_context>

<pallas_src>
import functools

import jax
import jax.numpy as jnp
from jax.experimental import pallas as pl
from jax.experimental.pallas import tpu as pltpu


def _round_up(x, m):
    return ((x + m - 1) // m) * m


def _vmem_budget_bytes():
    """Per-generation scoped-VMEM budget (headroom below the physical cap)."""
    try:
        cap = pltpu.get_tpu_info().vmem_capacity_bytes  # 64 MiB v7x, 128 MiB v5e/v6e
    except Exception:
        cap = 64 * 1024 * 1024                          # conservative fallback
    return int(min((cap * 3) // 4, 100 * 1024 * 1024))


def _lstm_kernel(xw_ref, whh_ref, h_out_ref, h_scr, c_scr, *, tt, hp, unroll):
    """One grid step == one block of TT time steps of the LSTM recurrence.

    xw_ref   : (TT, BB, 4*Hp) bf16  precomputed x@W_ih + bias for this block (i,f,o,g)
    whh_ref  : (Hp, 4*Hp)     bf16  packed hidden->gate weights (VMEM-resident, const)
    h_out_ref: (TT, BB, Hp)   f32   hidden states emitted for this block
    h_scr/c_scr : (BB, Hp)    f32   recurrent state carried across time blocks
    """
    t_blk = pl.program_id(1)

    @pl.when(t_blk == 0)
    def _():
        h_scr[...] = jnp.zeros_like(h_scr)
        c_scr[...] = jnp.zeros_like(c_scr)

    whh = whh_ref[...]  # (Hp, 4*Hp) bf16, stays resident across the unrolled steps

    def step(s, carry):
        h, c = carry
        # Single fused bf16 MXU call per time step, f32 accumulation.
        gates = xw_ref[s].astype(jnp.float32) + jnp.dot(
            h.astype(jnp.bfloat16), whh, preferred_element_type=jnp.float32)
        # Gate order (i, f, o, g): one sigmoid over the contiguous 3*Hp slab,
        # one tanh over the g slab -- full-vreg EUP launches, all f32 math.
        sig = jax.nn.sigmoid(gates[:, : 3 * hp])
        g = jnp.tanh(gates[:, 3 * hp:])
        i = sig[:, :hp]
        f = sig[:, hp: 2 * hp]
        o = sig[:, 2 * hp: 3 * hp]
        c_new = f * c + i * g
        h_new = o * jnp.tanh(c_new)
        h_out_ref[s] = h_new
        return (h_new, c_new)

    h_fin, c_fin = jax.lax.fori_loop(0, tt, step, (h_scr[...], c_scr[...]),
                                     unroll=unroll)
    h_scr[...] = h_fin
    c_scr[...] = c_fin


@functools.partial(jax.jit, static_argnames=("hidden_size",))
def easy_lstm_forward(x, packed, *, hidden_size):
    """x: (B, T, NX) float32 -> (B, T, NY) float32 (batch_first, eval-mode EasyLstm)."""
    del hidden_size  # layout info is carried by the packed params
    B, T, NX = x.shape
    Hp = packed["w_hh"].shape[0]          # padded hidden size (multiple of 128)
    NY = packed["w_out"].shape[1]

    budget = _vmem_budget_bytes()

    # --- batch tiling ---------------------------------------------------------
    if B <= 8:
        BB = _round_up(max(B, 1), 8)      # single block == full padded batch
    elif B <= 512:
        # >= 2 blocks so the parallel axis can span both v7x TensorCores;
        # 16-row aligned so bf16 xw blocks stay native-tile aligned.
        BB = _round_up((B + 1) // 2, 16)
    else:
        BB = 256                          # fill MXU rows, amortize weight stream
    Bp = _round_up(B, BB)
    nb = Bp // BB

    # --- time tiling from the VMEM budget -------------------------------------
    # fixed:   resident whh (bf16, single-buffered) + h/c scratch (f32) + slack
    # per-step pipelined: xw bf16 (2 buffers) + h_out f32 (2 buffers)
    fixed = Hp * 4 * Hp * 2 + 2 * BB * Hp * 4 + (4 << 20)
    per_step = 2 * BB * 4 * Hp * 2 + 2 * BB * Hp * 4      # = 24 * BB * Hp bytes
    tt_cap = max(1, (budget - fixed) // per_step)
    TT = int(max(1, min(16, tt_cap, T)))
    T_pad = _round_up(T, TT)
    nt = T_pad // TT

    # --- adaptive unroll: keep live gate tiles inside the vreg file -----------
    gates_bytes = BB * 4 * Hp * 4
    if gates_bytes <= 64 * 1024:
        unroll = TT
    elif gates_bytes <= 256 * 1024:
        unroll = min(TT, 4)
    else:
        unroll = min(TT, 2)
    unroll = max(int(unroll), 1)

    # --- input projection for ALL time steps: one big XLA matmul --------------
    # Emitted time-major, f32 accumulate, then streamed to the kernel as bf16.
    x_p = jnp.pad(x.astype(jnp.float32),
                  ((0, Bp - B), (0, T_pad - T), (0, 0)))
    xw = jnp.einsum("btn,nh->tbh", x_p, packed["w_ih"]) + packed["bias"]
    xw = xw.astype(jnp.bfloat16)          # (T_pad, Bp, 4*Hp)

    # --- sequential recurrence in Pallas --------------------------------------
    h_all = pl.pallas_call(
        functools.partial(_lstm_kernel, tt=TT, hp=Hp, unroll=unroll),
        out_shape=jax.ShapeDtypeStruct((T_pad, Bp, Hp), jnp.float32),
        grid_spec=pltpu.PrefetchScalarGridSpec(
            num_scalar_prefetch=0,
            grid=(nb, nt),
            in_specs=[
                pl.BlockSpec((TT, BB, 4 * Hp), lambda b, t: (t, b, 0)),
                # Constant weight block: whole array resident in VMEM,
                # single-buffered (no pipelining needed for an invariant operand).
                pl.BlockSpec(memory_space=pltpu.MemorySpace.VMEM),
            ],
            out_specs=pl.BlockSpec((TT, BB, Hp), lambda b, t: (t, b, 0)),
            scratch_shapes=[
                pltpu.VMEM((BB, Hp), jnp.float32),  # h state
                pltpu.VMEM((BB, Hp), jnp.float32),  # c state
            ],
        ),
        compiler_params=pltpu.CompilerParams(
            # batch blocks are independent -> megacore-parallel on v7x;
            # the time axis is a true recurrence -> arbitrary (sequential).
            dimension_semantics=("parallel", "arbitrary"),
            vmem_limit_bytes=budget,
        ),
    )(xw, packed["w_hh"])

    # --- output Linear head: one big lane-dense XLA matmul --------------------
    out = jnp.einsum("tbh,hy->bty", h_all[:T, :B, :], packed["w_out"]) + packed["b_out"]
    return out


def init_easy_lstm_params(key, *, nx, ny, hidden_size):
    """Deterministic init matching the PyTorch module's _init_weights (raw layout)."""
    H = hidden_size
    k_ih, k_hh, k_wo, k_bo = jax.random.split(key, 4)

    # weight_ih_l0: xavier uniform, shape (4H, nx)
    bound_ih = (6.0 / (4 * H + nx)) ** 0.5
    w_ih = jax.random.uniform(k_ih, (4 * H, nx), jnp.float32, -bound_ih, bound_ih)

    # weight_hh_l0: orthogonal, shape (4H, H)  (4H >= H -> orthonormal columns)
    a = jax.random.normal(k_hh, (4 * H, H), jnp.float32)
    q, r = jnp.linalg.qr(a)
    q = q * jnp.sign(jnp.diag(r))[None, :]
    w_hh = q

    # biases: zeros except forget-gate slice = 1 (for BOTH bias_ih and bias_hh)
    b_ih = jnp.zeros((4 * H,), jnp.float32).at[H:2 * H].set(1.0)
    b_hh = jnp.zeros((4 * H,), jnp.float32).at[H:2 * H].set(1.0)

    # linearOut: PyTorch default uniform(-1/sqrt(H), 1/sqrt(H))
    bound_o = 1.0 / (H ** 0.5)
    w_lin = jax.random.uniform(k_wo, (ny, H), jnp.float32, -bound_o, bound_o)
    b_lin = jax.random.uniform(k_bo, (ny,), jnp.float32, -bound_o, bound_o)

    return {"w_ih": w_ih, "w_hh": w_hh, "b_ih": b_ih, "b_hh": b_hh,
            "w_lin": w_lin, "b_lin": b_lin}


def pack_params(raw, *, hidden_size):
    """Repack raw PyTorch-layout params into fused, lane-padded kernel layouts.

    Gate order is changed from PyTorch's (i,f,g,o) to (i,f,o,g) inside the packed
    4*Hp axis (a pure column permutation applied consistently to W_ih, W_hh and the
    bias, so the math is unchanged).  Hidden size is zero-padded to Hp = roundup(H,128).
    W_hh is stored in bf16 (the kernel's matmul operand dtype); everything touched by
    XLA-side matmuls stays f32.
    """
    H = hidden_size
    Hp = _round_up(H, 128)
    NX = raw["w_ih"].shape[1]
    NY = raw["w_lin"].shape[0]

    def reorder(parts):                   # (i, f, g, o) -> (i, f, o, g)
        i, f, g, o = parts
        return [i, f, o, g]

    def pack_w(w, in_dim, in_dim_p):
        # w: (4H, in_dim) with rows W[g] s.t. gate pre-act = x @ W[g].T
        gates = reorder(jnp.split(w, 4, axis=0))          # each (H, in_dim)
        cols = []
        for wg in gates:
            wt = jnp.pad(wg.T, ((0, in_dim_p - in_dim), (0, Hp - H)))
            cols.append(wt)                               # (in_dim_p, Hp)
        return jnp.concatenate(cols, axis=1)              # (in_dim_p, 4*Hp)

    bias = raw["b_ih"] + raw["b_hh"]                      # combined (4H,)
    bias_parts = reorder(jnp.split(bias, 4))
    bias_p = jnp.concatenate([jnp.pad(b, (0, Hp - H)) for b in bias_parts])  # (4*Hp,)

    return {
        "w_ih": pack_w(raw["w_ih"], NX, NX),                        # (NX, 4*Hp) f32
        "w_hh": pack_w(raw["w_hh"], H, Hp).astype(jnp.bfloat16),    # (Hp, 4*Hp) bf16
        "bias": bias_p,                                             # (4*Hp,) f32
        "w_out": jnp.pad(raw["w_lin"].T, ((0, Hp - H), (0, 0))),    # (Hp, NY) f32
        "b_out": raw["b_lin"].reshape(1, NY),                       # (1, NY) f32
    }


def _reference_forward(x, raw):
    """Pure-JAX f32 reference (lax.scan LSTM, PyTorch gate order) for correctness check."""
    w_ih, w_hh = raw["w_ih"], raw["w_hh"]
    b = raw["b_ih"] + raw["b_hh"]
    w_lin, b_lin = raw["w_lin"], raw["b_lin"]
    H = w_hh.shape[1]
    B = x.shape[0]
    x_tm = jnp.transpose(x, (1, 0, 2))  # (T, B, NX)

    def step(carry, xt):
        h, c = carry
        gates = xt @ w_ih.T + h @ w_hh.T + b           # (B, 4H) order i,f,g,o
        i = jax.nn.sigmoid(gates[:, :H])
        f = jax.nn.sigmoid(gates[:, H:2 * H])
        g = jnp.tanh(gates[:, 2 * H:3 * H])
        o = jax.nn.sigmoid(gates[:, 3 * H:])
        c_new = f * c + i * g
        h_new = o * jnp.tanh(c_new)
        return (h_new, c_new), h_new @ w_lin.T + b_lin

    init = (jnp.zeros((B, H), jnp.float32), jnp.zeros((B, H), jnp.float32))
    _, out_tm = jax.lax.scan(step, init, x_tm)
    return jnp.transpose(out_tm, (1, 0, 2))


if __name__ == "__main__":
    # Small shapes consistent with EasyLstm(nx, ny, hidden_size) on (B, T, nx) input.
    B, T, NX, H, NY = 2, 8, 4, 32, 3

    key = jax.random.PRNGKey(0)
    k_x, k_p = jax.random.split(key)
    x = jax.random.normal(k_x, (B, T, NX), jnp.float32)

    raw = init_easy_lstm_params(k_p, nx=NX, ny=NY, hidden_size=H)
    packed = pack_params(raw, hidden_size=H)

    out = easy_lstm_forward(x, packed, hidden_size=H)
    out = jax.block_until_ready(out)

    ref = _reference_forward(x, raw)
    assert out.shape == (B, T, NY)
    # bf16 matmul operands / bf16 xw stream -> loosened tolerance vs the f32 reference.
    max_err = float(jnp.max(jnp.abs(out - ref)))
    assert jnp.allclose(out, ref, atol=5e-2, rtol=5e-2), \
        f"mismatch vs reference: max abs err {max_err}"

    print("KERNEL_OK")
</pallas_src>

<mosaic_0001>
module attributes {stable_mosaic.version = 11 : i64} {
  func.func @_lstm_kernel(%arg0: i32, %arg1: i32, %arg2: memref<8x8x512xbf16, #tpu.memory_space<vmem>>, %arg3: memref<128x512xbf16, #tpu.memory_space<vmem>>, %arg4: memref<8x8x128xf32, #tpu.memory_space<vmem>>, %arg5: memref<8x128xf32, #tpu.memory_space<vmem>>, %arg6: memref<8x128xf32, #tpu.memory_space<vmem>>) attributes {dimension_semantics = [#tpu.dimension_semantics<parallel>, #tpu.dimension_semantics<arbitrary>], iteration_bounds = array<i64: 1, 1>, scalar_prefetch = 0 : i64, scratch_operands = 2 : i64, tpu.core_type = #tpu.core_type<tc>, window_params = [{transform_indices = @transform_0, window_bounds = array<i64: 8, 8, 512>}, {pipeline_mode = #tpu.pipeline_mode<synchronous>, transform_indices = @transform_1, window_bounds = array<i64: 128, 512>}, {transform_indices = @transform_2, window_bounds = array<i64: 8, 8, 128>}]} {
    %c0_i32 = arith.constant 0 : i32
    %0 = arith.cmpi eq, %arg1, %c0_i32 : i32
    %1 = arith.extui %0 : i1 to i32
    %c0_i32_0 = arith.constant 0 : i32
    %2 = arith.cmpi ne, %1, %c0_i32_0 : i32
    scf.if %2 {
      %cst_58 = arith.constant 0.000000e+00 : f32
      %224 = vector.broadcast %cst_58 : f32 to vector<8x128xf32>
      %c0_59 = arith.constant 0 : index
      %c0_60 = arith.constant 0 : index
      %225 = vector.load %arg5[%c0_59, %c0_60] : memref<8x128xf32, #tpu.memory_space<vmem>>, vector<8x128xf32>
      tpu.vector_store %arg5[%c0_59, %c0_60], %224 {strides = array<i32>} : memref<8x128xf32, #tpu.memory_space<vmem>>, vector<8x128xf32>,
      %cst_61 = arith.constant 0.000000e+00 : f32
      %226 = vector.broadcast %cst_61 : f32 to vector<8x128xf32>
      %c0_62 = arith.constant 0 : index
      %c0_63 = arith.constant 0 : index
      %227 = vector.load %arg6[%c0_62, %c0_63] : memref<8x128xf32, #tpu.memory_space<vmem>>, vector<8x128xf32>
      tpu.vector_store %arg6[%c0_62, %c0_63], %226 {strides = array<i32>} : memref<8x128xf32, #tpu.memory_space<vmem>>, vector<8x128xf32>,
    } else {
    }
    %c0 = arith.constant 0 : index
    %c0_1 = arith.constant 0 : index
    %3 = vector.load %arg3[%c0, %c0_1] : memref<128x512xbf16, #tpu.memory_space<vmem>>, vector<128x512xbf16>
    %c0_2 = arith.constant 0 : index
    %c0_3 = arith.constant 0 : index
    %4 = vector.load %arg5[%c0_2, %c0_3] : memref<8x128xf32, #tpu.memory_space<vmem>>, vector<8x128xf32>
    %c0_4 = arith.constant 0 : index
    %c0_5 = arith.constant 0 : index
    %5 = vector.load %arg6[%c0_4, %c0_5] : memref<8x128xf32, #tpu.memory_space<vmem>>, vector<8x128xf32>
    %c0_i32_6 = arith.constant 0 : i32
    %6 = arith.index_cast %c0_i32_6 : i32 to index
    %c0_7 = arith.constant 0 : index
    %c0_8 = arith.constant 0 : index
    %7 = vector.load %arg2[%6, %c0_7, %c0_8] : memref<8x8x512xbf16, #tpu.memory_space<vmem>>, vector<1x8x512xbf16>
    %8 = vector.shape_cast %7 : vector<1x8x512xbf16> to vector<8x512xbf16>
    %9 = arith.extf %8 : vector<8x512xbf16> to vector<8x512xf32>
    %10 = arith.truncf %4 : vector<8x128xf32> to vector<8x128xbf16>
    %cst = arith.constant dense<0.000000e+00> : vector<8x512xf32>
    %11 = tpu.matmul %10, %3, %cst {dimension_numbers = #tpu.dot_dimension_numbers<[1], [0], [0], [1], [0, 0, 1, 1], [], []>} : vector<8x128xbf16>, vector<128x512xbf16>, vector<8x512xf32> -> vector<8x512xf32>
    %12 = arith.addf %9, %11 : vector<8x512xf32>
    %13 = vector.extract_strided_slice %12 {offsets = [0, 0], sizes = [8, 384], strides = [1, 1]} : vector<8x512xf32> to vector<8x384xf32>
    %14 = arith.negf %13 : vector<8x384xf32>
    %15 = math.exp %14 : vector<8x384xf32>
    %cst_9 = arith.constant 1.000000e+00 : f32
    %16 = vector.broadcast %cst_9 : f32 to vector<8x384xf32>
    %17 = arith.addf %16, %15 : vector<8x384xf32>
    %18 = arith.divf %16, %17 : vector<8x384xf32>
    %19 = vector.extract_strided_slice %12 {offsets = [0, 384], sizes = [8, 128], strides = [1, 1]} : vector<8x512xf32> to vector<8x128xf32>
    %20 = math.tanh %19 : vector<8x128xf32>
    %21 = vector.extract_strided_slice %18 {offsets = [0, 0], sizes = [8, 128], strides = [1, 1]} : vector<8x384xf32> to vector<8x128xf32>
    %22 = vector.extract_strided_slice %18 {offsets = [0, 128], sizes = [8, 128], strides = [1, 1]} : vector<8x384xf32> to vector<8x128xf32>
    %23 = vector.extract_strided_slice %18 {offsets = [0, 256], sizes = [8, 128], strides = [1, 1]} : vector<8x384xf32> to vector<8x128xf32>
    %24 = arith.mulf %22, %5 : vector<8x128xf32>
    %25 = arith.mulf %21, %20 : vector<8x128xf32>
    %26 = arith.addf %24, %25 : vector<8x128xf32>
    %27 = math.tanh %26 : vector<8x128xf32>
    %28 = arith.mulf %23, %27 : vector<8x128xf32>
    %29 = arith.index_cast %c0_i32_6 : i32 to index
    %c0_10 = arith.constant 0 : index
    %c0_11 = arith.constant 0 : index
    %30 = vector.load %arg4[%29, %c0_10, %c0_11] : memref<8x8x128xf32, #tpu.memory_space<vmem>>, vector<1x8x128xf32>
    %31 = vector.shape_cast %30 : vector<1x8x128xf32> to vector<8x128xf32>
    %32 = vector.shape_cast %28 : vector<8x128xf32> to vector<1x8x128xf32>
    tpu.vector_store %arg4[%29, %c0_10, %c0_11], %32 {strides = array<i32>} : memref<8x8x128xf32, #tpu.memory_space<vmem>>, vector<1x8x128xf32>,
    %c1_i32 = arith.constant 1 : i32
    %33 = arith.index_cast %c1_i32 : i32 to index
    %c0_12 = arith.constant 0 : index
    %c0_13 = arith.constant 0 : index
    %34 = vector.load %arg2[%33, %c0_12, %c0_13] : memref<8x8x512xbf16, #tpu.memory_space<vmem>>, vector<1x8x512xbf16>
    %35 = vector.shape_cast %34 : vector<1x8x512xbf16> to vector<8x512xbf16>
    %36 = arith.extf %35 : vector<8x512xbf16> to vector<8x512xf32>
    %37 = arith.truncf %28 : vector<8x128xf32> to vector<8x128xbf16>
    %cst_14 = arith.constant dense<0.000000e+00> : vector<8x512xf32>
    %38 = tpu.matmul %37, %3, %cst_14 {dimension_numbers = #tpu.dot_dimension_numbers<[1], [0], [0], [1], [0, 0, 1, 1], [], []>} : vector<8x128xbf16>, vector<128x512xbf16>, vector<8x512xf32> -> vector<8x512xf32>
    %39 = arith.addf %36, %38 : vector<8x512xf32>
    %40 = vector.extract_strided_slice %39 {offsets = [0, 0], sizes = [8, 384], strides = [1, 1]} : vector<8x512xf32> to vector<8x384xf32>
    %41 = arith.negf %40 : vector<8x384xf32>
    %42 = math.exp %41 : vector<8x384xf32>
    %cst_15 = arith.constant 1.000000e+00 : f32
    %43 = vector.broadcast %cst_15 : f32 to vector<8x384xf32>
    %44 = arith.addf %43, %42 : vector<8x384xf32>
    %45 = arith.divf %43, %44 : vector<8x384xf32>
    %46 = vector.extract_strided_slice %39 {offsets = [0, 384], sizes = [8, 128], strides = [1, 1]} : vector<8x512xf32> to vector<8x128xf32>
    %47 = math.tanh %46 : vector<8x128xf32>
    %48 = vector.extract_strided_slice %45 {offsets = [0, 0], sizes = [8, 128], strides = [1, 1]} : vector<8x384xf32> to vector<8x128xf32>
    %49 = vector.extract_strided_slice %45 {offsets = [0, 128], sizes = [8, 128], strides = [1, 1]} : vector<8x384xf32> to vector<8x128xf32>
    %50 = vector.extract_strided_slice %45 {offsets = [0, 256], sizes = [8, 128], strides = [1, 1]} : vector<8x384xf32> to vector<8x128xf32>
    %51 = arith.mulf %49, %26 : vector<8x128xf32>
    %52 = arith.mulf %48, %47 : vector<8x128xf32>
    %53 = arith.addf %51, %52 : vector<8x128xf32>
    %54 = math.tanh %53 : vector<8x128xf32>
    %55 = arith.mulf %50, %54 : vector<8x128xf32>
    %56 = arith.index_cast %c1_i32 : i32 to index
    %c0_16 = arith.constant 0 : index
    %c0_17 = arith.constant 0 : index
    %57 = vector.load %arg4[%56, %c0_16, %c0_17] : memref<8x8x128xf32, #tpu.memory_space<vmem>>, vector<1x8x128xf32>
    %58 = vector.shape_cast %57 : vector<1x8x128xf32> to vector<8x128xf32>
    %59 = vector.shape_cast %55 : vector<8x128xf32> to vector<1x8x128xf32>
    tpu.vector_store %arg4[%56, %c0_16, %c0_17], %59 {strides = array<i32>} : memref<8x8x128xf32, #tpu.memory_space<vmem>>, vector<1x8x128xf32>,
    %c2_i32 = arith.constant 2 : i32
    %60 = arith.index_cast %c2_i32 : i32 to index
    %c0_18 = arith.constant 0 : index
    %c0_19 = arith.constant 0 : index
    %61 = vector.load %arg2[%60, %c0_18, %c0_19] : memref<8x8x512xbf16, #tpu.memory_space<vmem>>, vector<1x8x512xbf16>
    %62 = vector.shape_cast %61 : vector<1x8x512xbf16> to vector<8x512xbf16>
    %63 = arith.extf %62 : vector<8x512xbf16> to vector<8x512xf32>
    %64 = arith.truncf %55 : vector<8x128xf32> to vector<8x128xbf16>
    %cst_20 = arith.constant dense<0.000000e+00> : vector<8x512xf32>
    %65 = tpu.matmul %64, %3, %cst_20 {dimension_numbers = #tpu.dot_dimension_numbers<[1], [0], [0], [1], [0, 0, 1, 1], [], []>} : vector<8x128xbf16>, vector<128x512xbf16>, vector<8x512xf32> -> vector<8x512xf32>
    %66 = arith.addf %63, %65 : vector<8x512xf32>
    %67 = vector.extract_strided_slice %66 {offsets = [0, 0], sizes = [8, 384], strides = [1, 1]} : vector<8x512xf32> to vector<8x384xf32>
    %68 = arith.negf %67 : vector<8x384xf32>
    %69 = math.exp %68 : vector<8x384xf32>
    %cst_21 = arith.constant 1.000000e+00 : f32
    %70 = vector.broadcast %cst_21 : f32 to vector<8x384xf32>
    %71 = arith.addf %70, %69 : vector<8x384xf32>
    %72 = arith.divf %70, %71 : vector<8x384xf32>
    %73 = vector.extract_strided_slice %66 {offsets = [0, 384], sizes = [8, 128], strides = [1, 1]} : vector<8x512xf32> to vector<8x128xf32>
    %74 = math.tanh %73 : vector<8x128xf32>
    %75 = vector.extract_strided_slice %72 {offsets = [0, 0], sizes = [8, 128], strides = [1, 1]} : vector<8x384xf32> to vector<8x128xf32>
    %76 = vector.extract_strided_slice %72 {offsets = [0, 128], sizes = [8, 128], strides = [1, 1]} : vector<8x384xf32> to vector<8x128xf32>
    %77 = vector.extract_strided_slice %72 {offsets = [0, 256], sizes = [8, 128], strides = [1, 1]} : vector<8x384xf32> to vector<8x128xf32>
    %78 = arith.mulf %76, %53 : vector<8x128xf32>
    %79 = arith.mulf %75, %74 : vector<8x128xf32>
    %80 = arith.addf %78, %79 : vector<8x128xf32>
    %81 = math.tanh %80 : vector<8x128xf32>
    %82 = arith.mulf %77, %81 : vector<8x128xf32>
    %83 = arith.index_cast %c2_i32 : i32 to index
    %c0_22 = arith.constant 0 : index
    %c0_23 = arith.constant 0 : index
    %84 = vector.load %arg4[%83, %c0_22, %c0_23] : memref<8x8x128xf32, #tpu.memory_space<vmem>>, vector<1x8x128xf32>
    %85 = vector.shape_cast %84 : vector<1x8x128xf32> to vector<8x128xf32>
    %86 = vector.shape_cast %82 : vector<8x128xf32> to vector<1x8x128xf32>
    tpu.vector_store %arg4[%83, %c0_22, %c0_23], %86 {strides = array<i32>} : memref<8x8x128xf32, #tpu.memory_space<vmem>>, vector<1x8x128xf32>,
    %c3_i32 = arith.constant 3 : i32
    %87 = arith.index_cast %c3_i32 : i32 to index
    %c0_24 = arith.constant 0 : index
    %c0_25 = arith.constant 0 : index
    %88 = vector.load %arg2[%87, %c0_24, %c0_25] : memref<8x8x512xbf16, #tpu.memory_space<vmem>>, vector<1x8x512xbf16>
    %89 = vector.shape_cast %88 : vector<1x8x512xbf16> to vector<8x512xbf16>
    %90 = arith.extf %89 : vector<8x512xbf16> to vector<8x512xf32>
    %91 = arith.truncf %82 : vector<8x128xf32> to vector<8x128xbf16>
    %cst_26 = arith.constant dense<0.000000e+00> : vector<8x512xf32>
    %92 = tpu.matmul %91, %3, %cst_26 {dimension_numbers = #tpu.dot_dimension_numbers<[1], [0], [0], [1], [0, 0, 1, 1], [], []>} : vector<8x128xbf16>, vector<128x512xbf16>, vector<8x512xf32> -> vector<8x512xf32>
    %93 = arith.addf %90, %92 : vector<8x512xf32>
    %94 = vector.extract_strided_slice %93 {offsets = [0, 0], sizes = [8, 384], strides = [1, 1]} : vector<8x512xf32> to vector<8x384xf32>
    %95 = arith.negf %94 : vector<8x384xf32>
    %96 = math.exp %95 : vector<8x384xf32>
    %cst_27 = arith.constant 1.000000e+00 : f32
    %97 = vector.broadcast %cst_27 : f32 to vector<8x384xf32>
    %98 = arith.addf %97, %96 : vector<8x384xf32>
    %99 = arith.divf %97, %98 : vector<8x384xf32>
    %100 = vector.extract_strided_slice %93 {offsets = [0, 384], sizes = [8, 128], strides = [1, 1]} : vector<8x512xf32> to vector<8x128xf32>
    %101 = math.tanh %100 : vector<8x128xf32>
    %102 = vector.extract_strided_slice %99 {offsets = [0, 0], sizes = [8, 128], strides = [1, 1]} : vector<8x384xf32> to vector<8x128xf32>
    %103 = vector.extract_strided_slice %99 {offsets = [0, 128], sizes = [8, 128], strides = [1, 1]} : vector<8x384xf32> to vector<8x128xf32>
    %104 = vector.extract_strided_slice %99 {offsets = [0, 256], sizes = [8, 128], strides = [1, 1]} : vector<8x384xf32> to vector<8x128xf32>
    %105 = arith.mulf %103, %80 : vector<8x128xf32>
    %106 = arith.mulf %102, %101 : vector<8x128xf32>
    %107 = arith.addf %105, %106 : vector<8x128xf32>
    %108 = math.tanh %107 : vector<8x128xf32>
    %109 = arith.mulf %104, %108 : vector<8x128xf32>
    %110 = arith.index_cast %c3_i32 : i32 to index
    %c0_28 = arith.constant 0 : index
    %c0_29 = arith.constant 0 : index
    %111 = vector.load %arg4[%110, %c0_28, %c0_29] : memref<8x8x128xf32, #tpu.memory_space<vmem>>, vector<1x8x128xf32>
    %112 = vector.shape_cast %111 : vector<1x8x128xf32> to vector<8x128xf32>
    %113 = vector.shape_cast %109 : vector<8x128xf32> to vector<1x8x128xf32>
    tpu.vector_store %arg4[%110, %c0_28, %c0_29], %113 {strides = array<i32>} : memref<8x8x128xf32, #tpu.memory_space<vmem>>, vector<1x8x128xf32>,
    %c4_i32 = arith.constant 4 : i32
    %114 = arith.index_cast %c4_i32 : i32 to index
    %c0_30 = arith.constant 0 : index
    %c0_31 = arith.constant 0 : index
    %115 = vector.load %arg2[%114, %c0_30, %c0_31] : memref<8x8x512xbf16, #tpu.memory_space<vmem>>, vector<1x8x512xbf16>
    %116 = vector.shape_cast %115 : vector<1x8x512xbf16> to vector<8x512xbf16>
    %117 = arith.extf %116 : vector<8x512xbf16> to vector<8x512xf32>
    %118 = arith.truncf %109 : vector<8x128xf32> to vector<8x128xbf16>
    %cst_32 = arith.constant dense<0.000000e+00> : vector<8x512xf32>
    %119 = tpu.matmul %118, %3, %cst_32 {dimension_numbers = #tpu.dot_dimension_numbers<[1], [0], [0], [1], [0, 0, 1, 1], [], []>} : vector<8x128xbf16>, vector<128x512xbf16>, vector<8x512xf32> -> vector<8x512xf32>
    %120 = arith.addf %117, %119 : vector<8x512xf32>
    %121 = vector.extract_strided_slice %120 {offsets = [0, 0], sizes = [8, 384], strides = [1, 1]} : vector<8x512xf32> to vector<8x384xf32>
    %122 = arith.negf %121 : vector<8x384xf32>
    %123 = math.exp %122 : vector<8x384xf32>
    %cst_33 = arith.constant 1.000000e+00 : f32
    %124 = vector.broadcast %cst_33 : f32 to vector<8x384xf32>
    %125 = arith.addf %124, %123 : vector<8x384xf32>
    %126 = arith.divf %124, %125 : vector<8x384xf32>
    %127 = vector.extract_strided_slice %120 {offsets = [0, 384], sizes = [8, 128], strides = [1, 1]} : vector<8x512xf32> to vector<8x128xf32>
    %128 = math.tanh %127 : vector<8x128xf32>
    %129 = vector.extract_strided_slice %126 {offsets = [0, 0], sizes = [8, 128], strides = [1, 1]} : vector<8x384xf32> to vector<8x128xf32>
    %130 = vector.extract_strided_slice %126 {offsets = [0, 128], sizes = [8, 128], strides = [1, 1]} : vector<8x384xf32> to vector<8x128xf32>
    %131 = vector.extract_strided_slice %126 {offsets = [0, 256], sizes = [8, 128], strides = [1, 1]} : vector<8x384xf32> to vector<8x128xf32>
    %132 = arith.mulf %130, %107 : vector<8x128xf32>
    %133 = arith.mulf %129, %128 : vector<8x128xf32>
    %134 = arith.addf %132, %133 : vector<8x128xf32>
    %135 = math.tanh %134 : vector<8x128xf32>
    %136 = arith.mulf %131, %135 : vector<8x128xf32>
    %137 = arith.index_cast %c4_i32 : i32 to index
    %c0_34 = arith.constant 0 : index
    %c0_35 = arith.constant 0 : index
    %138 = vector.load %arg4[%137, %c0_34, %c0_35] : memref<8x8x128xf32, #tpu.memory_space<vmem>>, vector<1x8x128xf32>
    %139 = vector.shape_cast %138 : vector<1x8x128xf32> to vector<8x128xf32>
    %140 = vector.shape_cast %136 : vector<8x128xf32> to vector<1x8x128xf32>
    tpu.vector_store %arg4[%137, %c0_34, %c0_35], %140 {strides = array<i32>} : memref<8x8x128xf32, #tpu.memory_space<vmem>>, vector<1x8x128xf32>,
    %c5_i32 = arith.constant 5 : i32
    %141 = arith.index_cast %c5_i32 : i32 to index
    %c0_36 = arith.constant 0 : index
    %c0_37 = arith.constant 0 : index
    %142 = vector.load %arg2[%141, %c0_36, %c0_37] : memref<8x8x512xbf16, #tpu.memory_space<vmem>>, vector<1x8x512xbf16>
    %143 = vector.shape_cast %142 : vector<1x8x512xbf16> to vector<8x512xbf16>
    %144 = arith.extf %143 : vector<8x512xbf16> to vector<8x512xf32>
    %145 = arith.truncf %136 : vector<8x128xf32> to vector<8x128xbf16>
    %cst_38 = arith.constant dense<0.000000e+00> : vector<8x512xf32>
    %146 = tpu.matmul %145, %3, %cst_38 {dimension_numbers = #tpu.dot_dimension_numbers<[1], [0], [0], [1], [0, 0, 1, 1], [], []>} : vector<8x128xbf16>, vector<128x512xbf16>, vector<8x512xf32> -> vector<8x512xf32>
    %147 = arith.addf %144, %146 : vector<8x512xf32>
    %148 = vector.extract_strided_slice %147 {offsets = [0, 0], sizes = [8, 384], strides = [1, 1]} : vector<8x512xf32> to vector<8x384xf32>
    %149 = arith.negf %148 : vector<8x384xf32>
    %150 = math.exp %149 : vector<8x384xf32>
    %cst_39 = arith.constant 1.000000e+00 : f32
    %151 = vector.broadcast %cst_39 : f32 to vector<8x384xf32>
    %152 = arith.addf %151, %150 : vector<8x384xf32>
    %153 = arith.divf %151, %152 : vector<8x384xf32>
    %154 = vector.extract_strided_slice %147 {offsets = [0, 384], sizes = [8, 128], strides = [1, 1]} : vector<8x512xf32> to vector<8x128xf32>
    %155 = math.tanh %154 : vector<8x128xf32>
    %156 = vector.extract_strided_slice %153 {offsets = [0, 0], sizes = [8, 128], strides = [1, 1]} : vector<8x384xf32> to vector<8x128xf32>
    %157 = vector.extract_strided_slice %153 {offsets = [0, 128], sizes = [8, 128], strides = [1, 1]} : vector<8x384xf32> to vector<8x128xf32>
    %158 = vector.extract_strided_slice %153 {offsets = [0, 256], sizes = [8, 128], strides = [1, 1]} : vector<8x384xf32> to vector<8x128xf32>
    %159 = arith.mulf %157, %134 : vector<8x128xf32>
    %160 = arith.mulf %156, %155 : vector<8x128xf32>
    %161 = arith.addf %159, %160 : vector<8x128xf32>
    %162 = math.tanh %161 : vector<8x128xf32>
    %163 = arith.mulf %158, %162 : vector<8x128xf32>
    %164 = arith.index_cast %c5_i32 : i32 to index
    %c0_40 = arith.constant 0 : index
    %c0_41 = arith.constant 0 : index
    %165 = vector.load %arg4[%164, %c0_40, %c0_41] : memref<8x8x128xf32, #tpu.memory_space<vmem>>, vector<1x8x128xf32>
    %166 = vector.shape_cast %165 : vector<1x8x128xf32> to vector<8x128xf32>
    %167 = vector.shape_cast %163 : vector<8x128xf32> to vector<1x8x128xf32>
    tpu.vector_store %arg4[%164, %c0_40, %c0_41], %167 {strides = array<i32>} : memref<8x8x128xf32, #tpu.memory_space<vmem>>, vector<1x8x128xf32>,
    %c6_i32 = arith.constant 6 : i32
    %168 = arith.index_cast %c6_i32 : i32 to index
    %c0_42 = arith.constant 0 : index
    %c0_43 = arith.constant 0 : index
    %169 = vector.load %arg2[%168, %c0_42, %c0_43] : memref<8x8x512xbf16, #tpu.memory_space<vmem>>, vector<1x8x512xbf16>
    %170 = vector.shape_cast %169 : vector<1x8x512xbf16> to vector<8x512xbf16>
    %171 = arith.extf %170 : vector<8x512xbf16> to vector<8x512xf32>
    %172 = arith.truncf %163 : vector<8x128xf32> to vector<8x128xbf16>
    %cst_44 = arith.constant dense<0.000000e+00> : vector<8x512xf32>
    %173 = tpu.matmul %172, %3, %cst_44 {dimension_numbers = #tpu.dot_dimension_numbers<[1], [0], [0], [1], [0, 0, 1, 1], [], []>} : vector<8x128xbf16>, vector<128x512xbf16>, vector<8x512xf32> -> vector<8x512xf32>
    %174 = arith.addf %171, %173 : vector<8x512xf32>
    %175 = vector.extract_strided_slice %174 {offsets = [0, 0], sizes = [8, 384], strides = [1, 1]} : vector<8x512xf32> to vector<8x384xf32>
    %176 = arith.negf %175 : vector<8x384xf32>
    %177 = math.exp %176 : vector<8x384xf32>
    %cst_45 = arith.constant 1.000000e+00 : f32
    %178 = vector.broadcast %cst_45 : f32 to vector<8x384xf32>
    %179 = arith.addf %178, %177 : vector<8x384xf32>
    %180 = arith.divf %178, %179 : vector<8x384xf32>
    %181 = vector.extract_strided_slice %174 {offsets = [0, 384], sizes = [8, 128], strides = [1, 1]} : vector<8x512xf32> to vector<8x128xf32>
    %182 = math.tanh %181 : vector<8x128xf32>
    %183 = vector.extract_strided_slice %180 {offsets = [0, 0], sizes = [8, 128], strides = [1, 1]} : vector<8x384xf32> to vector<8x128xf32>
    %184 = vector.extract_strided_slice %180 {offsets = [0, 128], sizes = [8, 128], strides = [1, 1]} : vector<8x384xf32> to vector<8x128xf32>
    %185 = vector.extract_strided_slice %180 {offsets = [0, 256], sizes = [8, 128], strides = [1, 1]} : vector<8x384xf32> to vector<8x128xf32>
    %186 = arith.mulf %184, %161 : vector<8x128xf32>
    %187 = arith.mulf %183, %182 : vector<8x128xf32>
    %188 = arith.addf %186, %187 : vector<8x128xf32>
    %189 = math.tanh %188 : vector<8x128xf32>
    %190 = arith.mulf %185, %189 : vector<8x128xf32>
    %191 = arith.index_cast %c6_i32 : i32 to index
    %c0_46 = arith.constant 0 : index
    %c0_47 = arith.constant 0 : index
    %192 = vector.load %arg4[%191, %c0_46, %c0_47] : memref<8x8x128xf32, #tpu.memory_space<vmem>>, vector<1x8x128xf32>
    %193 = vector.shape_cast %192 : vector<1x8x128xf32> to vector<8x128xf32>
    %194 = vector.shape_cast %190 : vector<8x128xf32> to vector<1x8x128xf32>
    tpu.vector_store %arg4[%191, %c0_46, %c0_47], %194 {strides = array<i32>} : memref<8x8x128xf32, #tpu.memory_space<vmem>>, vector<1x8x128xf32>,
    %c7_i32 = arith.constant 7 : i32
    %195 = arith.index_cast %c7_i32 : i32 to index
    %c0_48 = arith.constant 0 : index
    %c0_49 = arith.constant 0 : index
    %196 = vector.load %arg2[%195, %c0_48, %c0_49] : memref<8x8x512xbf16, #tpu.memory_space<vmem>>, vector<1x8x512xbf16>
    %197 = vector.shape_cast %196 : vector<1x8x512xbf16> to vector<8x512xbf16>
    %198 = arith.extf %197 : vector<8x512xbf16> to vector<8x512xf32>
    %199 = arith.truncf %190 : vector<8x128xf32> to vector<8x128xbf16>
    %cst_50 = arith.constant dense<0.000000e+00> : vector<8x512xf32>
    %200 = tpu.matmul %199, %3, %cst_50 {dimension_numbers = #tpu.dot_dimension_numbers<[1], [0], [0], [1], [0, 0, 1, 1], [], []>} : vector<8x128xbf16>, vector<128x512xbf16>, vector<8x512xf32> -> vector<8x512xf32>
    %201 = arith.addf %198, %200 : vector<8x512xf32>
    %202 = vector.extract_strided_slice %201 {offsets = [0, 0], sizes = [8, 384], strides = [1, 1]} : vector<8x512xf32> to vector<8x384xf32>
    %203 = arith.negf %202 : vector<8x384xf32>
    %204 = math.exp %203 : vector<8x384xf32>
    %cst_51 = arith.constant 1.000000e+00 : f32
    %205 = vector.broadcast %cst_51 : f32 to vector<8x384xf32>
    %206 = arith.addf %205, %204 : vector<8x384xf32>
    %207 = arith.divf %205, %206 : vector<8x384xf32>
    %208 = vector.extract_strided_slice %201 {offsets = [0, 384], sizes = [8, 128], strides = [1, 1]} : vector<8x512xf32> to vector<8x128xf32>
    %209 = math.tanh %208 : vector<8x128xf32>
    %210 = vector.extract_strided_slice %207 {offsets = [0, 0], sizes = [8, 128], strides = [1, 1]} : vector<8x384xf32> to vector<8x128xf32>
    %211 = vector.extract_strided_slice %207 {offsets = [0, 128], sizes = [8, 128], strides = [1, 1]} : vector<8x384xf32> to vector<8x128xf32>
    %212 = vector.extract_strided_slice %207 {offsets = [0, 256], sizes = [8, 128], strides = [1, 1]} : vector<8x384xf32> to vector<8x128xf32>
    %213 = arith.mulf %211, %188 : vector<8x128xf32>
    %214 = arith.mulf %210, %209 : vector<8x128xf32>
    %215 = arith.addf %213, %214 : vector<8x128xf32>
    %216 = math.tanh %215 : vector<8x128xf32>
    %217 = arith.mulf %212, %216 : vector<8x128xf32>
    %218 = arith.index_cast %c7_i32 : i32 to index
    %c0_52 = arith.constant 0 : index
    %c0_53 = arith.constant 0 : index
    %219 = vector.load %arg4[%218, %c0_52, %c0_53] : memref<8x8x128xf32, #tpu.memory_space<vmem>>, vector<1x8x128xf32>
    %220 = vector.shape_cast %219 : vector<1x8x128xf32> to vector<8x128xf32>
    %221 = vector.shape_cast %217 : vector<8x128xf32> to vector<1x8x128xf32>
    tpu.vector_store %arg4[%218, %c0_52, %c0_53], %221 {strides = array<i32>} : memref<8x8x128xf32, #tpu.memory_space<vmem>>, vector<1x8x128xf32>,
    %c8_i32 = arith.constant 8 : i32
    %c0_54 = arith.constant 0 : index
    %c0_55 = arith.constant 0 : index
    %222 = vector.load %arg5[%c0_54, %c0_55] : memref<8x128xf32, #tpu.memory_space<vmem>>, vector<8x128xf32>
    tpu.vector_store %arg5[%c0_54, %c0_55], %217 {strides = array<i32>} : memref<8x128xf32, #tpu.memory_space<vmem>>, vector<8x128xf32>,
    %c0_56 = arith.constant 0 : index
    %c0_57 = arith.constant 0 : index
    %223 = vector.load %arg6[%c0_56, %c0_57] : memref<8x128xf32, #tpu.memory_space<vmem>>, vector<8x128xf32>
    tpu.vector_store %arg6[%c0_56, %c0_57], %215 {strides = array<i32>} : memref<8x128xf32, #tpu.memory_space<vmem>>, vector<8x128xf32>,
    return
  }
  func.func @transform_0(%arg0: i32, %arg1: i32) -> (i32, i32, i32) {
    %c0_i32 = arith.constant 0 : i32
    %c0_i32_0 = arith.constant 0 : i32
    return %arg1, %arg0, %c0_i32 : i32, i32, i32
  }
  func.func @transform_1(%arg0: i32, %arg1: i32) -> (i32, i32) {
    %c0_i32 = arith.constant 0 : i32
    %c0_i32_0 = arith.constant 0 : i32
    %c0_i32_1 = arith.constant 0 : i32
    return %c0_i32, %c0_i32_0 : i32, i32
  }
  func.func @transform_2(%arg0: i32, %arg1: i32) -> (i32, i32, i32) {
    %c0_i32 = arith.constant 0 : i32
    %c0_i32_0 = arith.constant 0 : i32
    return %arg1, %arg0, %c0_i32 : i32, i32, i32
  }
}

</mosaic_0001>

<bundles_post_ra>
// kernel: easy_lstm_forward.1
= control target key start
LH: loop header
LB: loop body
LE: loop exit
PB: predicated region body
PF: predicated region fallthrough
CT: control target
= control target key end

     0   :  { %7 = vsyncpa [#allocation5], 0  ;;  %s1627_s12 = smov [#allocation4]   ;;  %s1628_s14 = smov 256   ;;  %s2069_s0 = inlined_call_operand.vmem [shape: bf16[8,8,512], index: 0, kind: input, shape index: {}]   ;;  %s2070_s1 = inlined_call_operand.hbm [shape: bf16[128,512], index: 1, kind: input, shape index: {}]   ;;  %s2071_s2 = inlined_call_operand.vmem [shape: f32[8,8,128], index: 2, kind: output, shape index: {}]  }
   0x1   :  { %s14_s11 = sshll.u32 %s2070_s1, 4  ;;  %s16_s13 = sshll.u32 %s1627_s12, 4  ;;  %s15_s11 = int_to_ptr.hbm [resolvable:$true] %s14_s11  ;;  %s17_s13 = int_to_ptr.vmem [resolvable:$true] %s16_s13 }
   0x2   :  { %s1629_s15 = smov 16  }
   0x3   :  { %22 = dma.hbm_to_vmem [thread:$0]  %s15_s11, 4096, %s17_s13, [#allocation5], %s1628_s14, %s1628_s14, %s1629_s15  }
   0x4   :  { %1625 = dma.done.wait [#allocation5], 4096  }
   0x5   :  { %1626 = vsyncadd [#allocation5], 4294963200  ;;  %v1378_v0 = vld [vmem:[#allocation4 + $0xe0] sm:$0xf]  ;;  %v1467_v1 = vld [vmem:[#allocation4 + $0xec] sm:$0xf0] }
   0x6   :  { %v1465_v2 = vld [vmem:[#allocation4 + $0xe4] sm:$0xf]  ;;  %v1649_v3 = vor.u32 %v1467_v1, %v1378_v0  ;;  %v1380_v4 = vld [vmem:[#allocation4 + $0xf0] sm:$0xf0]  ;;  %v1386_v5 = vld [vmem:[#allocation4 + $0xe8] sm:$0xf] }
   0x7   :  { %v1468_v6 = vld [vmem:[#allocation4 + $0xf4] sm:$0xf0]  ;;  %v1651_v7 = vor.u32 %v1465_v2, %v1380_v4  ;;  %v1362_v9 = vld [vmem:[#allocation4 + $0xc0] sm:$0xf]  ;;  %v1463_v10 = vld [vmem:[#allocation4 + $0xcc] sm:$0xf0] }
   0x8   :  { %v1653_v8 = vor.u32 %v1468_v6, %v1386_v5  ;;  %v1461_v11 = vld [vmem:[#allocation4 + $0xc4] sm:$0xf]  ;;  %234 = vmatpush.bf16.msra.mxu0 %v1649_v3  ;;  %v1656_v12 = vor.u32 %v1463_v10, %v1362_v9  ;;  %v1364_v13 = vld [vmem:[#allocation4 + $0xd0] sm:$0xf0]  ;;  %v1370_v14 = vld [vmem:[#allocation4 + $0xc8] sm:$0xf] }
   0x9   :  { %v1464_v15 = vld [vmem:[#allocation4 + $0xd4] sm:$0xf0]  ;;  %247 = vmatpush.bf16.msra.mxu1 %v1651_v7  ;;  %v1660_v16 = vor.u32 %v1461_v11, %v1364_v13  ;;  %v1466_v18 = vld [vmem:[#allocation4 + $0xec] sm:$0xf]  ;;  %v1388_v19 = vld [vmem:[#allocation4 + $0xf8] sm:$0xf0] }
   0xa   :  { %260 = vmatpush.bf16.msra.mxu2 %v1653_v8  ;;  %v1662_v17 = vor.u32 %v1464_v15, %v1370_v14  ;;  %v1346_v20 = vld [vmem:[#allocation4 + $0xa0] sm:$0xf]  ;;  %v1664_v21 = vor.u32 %v1466_v18, %v1388_v19  ;;  %v1459_v22 = vld [vmem:[#allocation4 + $0xac] sm:$0xf0]  ;;  %v1457_v23 = vld [vmem:[#allocation4 + $0xa4] sm:$0xf] }
   0xb   :  { %v1348_v24 = vld [vmem:[#allocation4 + $0xb0] sm:$0xf0]  ;;  %v1354_v25 = vld [vmem:[#allocation4 + $0xa8] sm:$0xf]  ;;  %v1460_v26 = vld [vmem:[#allocation4 + $0xb4] sm:$0xf0]  ;;  %v1668_v28 = vor.u32 %v1459_v22, %v1346_v20 }
   0xc   :  { %v1462_v27 = vld [vmem:[#allocation4 + $0xcc] sm:$0xf]  ;;  %235 = vmatpush.bf16.msra.mxu0 %v1656_v12  ;;  %273 = vmatpush.bf16.msra.mxu3 %v1664_v21  ;;  %v1372_v29 = vld [vmem:[#allocation4 + $0xd8] sm:$0xf0]  ;;  %v1330_v30 = vld [vmem:[#allocation4 + $0x80] sm:$0xf]  ;;  %v1672_v32 = vor.u32 %v1457_v23, %v1348_v24  ;;  %v1674_v33 = vor.u32 %v1460_v26, %v1354_v25 }
   0xd   :  { %v1455_v31 = vld [vmem:[#allocation4 + $0x8c] sm:$0xf0]  ;;  %248 = vmatpush.bf16.msra.mxu1 %v1660_v16  ;;  %v1676_v34 = vor.u32 %v1462_v27, %v1372_v29  ;;  %v1453_v35 = vld [vmem:[#allocation4 + $0x84] sm:$0xf]  ;;  %v1332_v36 = vld [vmem:[#allocation4 + $0x90] sm:$0xf0] }
   0xe   :  { %261 = vmatpush.bf16.msra.mxu2 %v1662_v17  ;;  %v1338_v37 = vld [vmem:[#allocation4 + $0x88] sm:$0xf]  ;;  %v1456_v38 = vld [vmem:[#allocation4 + $0x94] sm:$0xf0]  ;;  %v1458_v39 = vld [vmem:[#allocation4 + $0xac] sm:$0xf]  ;;  %v1680_v41 = vor.u32 %v1455_v31, %v1330_v30  ;;  %v1686_v45 = vor.u32 %v1453_v35, %v1332_v36 }
   0xf   :  { %v1356_v40 = vld [vmem:[#allocation4 + $0xb8] sm:$0xf0]  ;;  %v1314_v43 = vld [vmem:[#allocation4 + $0x60] sm:$0xf]  ;;  %v1451_v44 = vld [vmem:[#allocation4 + $0x6c] sm:$0xf0]  ;;  %v1688_v46 = vor.u32 %v1456_v38, %v1338_v37 }
  0x10   :  { %236 = vmatpush.bf16.msra.mxu0 %v1668_v28  ;;  %274 = vmatpush.bf16.msra.mxu3 %v1676_v34  ;;  %v1682_v42 = vor.u32 %v1458_v39, %v1356_v40  ;;  %v1449_v47 = vld [vmem:[#allocation4 + $0x64] sm:$0xf]  ;;  %v1454_v48 = vld [vmem:[#allocation4 + $0x8c] sm:$0xf]  ;;  %v1340_v49 = vld [vmem:[#allocation4 + $0x98] sm:$0xf0]  ;;  %v1692_v53 = vor.u32 %v1451_v44, %v1314_v43 }
  0x11   :  { %249 = vmatpush.bf16.msra.mxu1 %v1672_v32  ;;  %v1316_v50 = vld [vmem:[#allocation4 + $0x70] sm:$0xf0]  ;;  %v1322_v51 = vld [vmem:[#allocation4 + $0x68] sm:$0xf]  ;;  %v1452_v52 = vld [vmem:[#allocation4 + $0x74] sm:$0xf0]  ;;  %v1694_v54 = vor.u32 %v1454_v48, %v1340_v49 }
  0x12   :  { %262 = vmatpush.bf16.msra.mxu2 %v1674_v33  ;;  %v1298_v55 = vld [vmem:[#allocation4 + $0x40] sm:$0xf]  ;;  %v1447_v56 = vld [vmem:[#allocation4 + $0x4c] sm:$0xf0]  ;;  %v1698_v57 = vor.u32 %v1449_v47, %v1316_v50  ;;  %v1700_v58 = vor.u32 %v1452_v52, %v1322_v51  ;;  %v1445_v59 = vld [vmem:[#allocation4 + $0x44] sm:$0xf] }
  0x13   :  { %v1450_v60 = vld [vmem:[#allocation4 + $0x6c] sm:$0xf]  ;;  %v1324_v61 = vld [vmem:[#allocation4 + $0x78] sm:$0xf0]  ;;  %v1300_v62 = vld [vmem:[#allocation4 + $0x50] sm:$0xf0]  ;;  %v1704_v1 = vor.u32 %v1447_v56, %v1298_v55 }
  0x14   :  { %237 = vmatpush.bf16.msra.mxu0 %v1680_v41  ;;  %275 = vmatpush.bf16.msra.mxu3 %v1682_v42  ;;  %v1306_v63 = vld [vmem:[#allocation4 + $0x48] sm:$0xf]  ;;  %v1448_v0 = vld [vmem:[#allocation4 + $0x54] sm:$0xf0]  ;;  %v1706_v2 = vor.u32 %v1450_v60, %v1324_v61  ;;  %v1282_v4 = vld [vmem:[#allocation4 + $0x20] sm:$0xf]  ;;  %v1710_v6 = vor.u32 %v1445_v59, %v1300_v62 }
  0x15   :  { %250 = vmatpush.bf16.msra.mxu1 %v1686_v45  ;;  %v1443_v5 = vld [vmem:[#allocation4 + $0x2c] sm:$0xf0]  ;;  %v1712_v9 = vor.u32 %v1448_v0, %v1306_v63  ;;  %v1441_v10 = vld [vmem:[#allocation4 + $0x24] sm:$0xf]  ;;  %v1446_v11 = vld [vmem:[#allocation4 + $0x4c] sm:$0xf] }
  0x16   :  { %263 = vmatpush.bf16.msra.mxu2 %v1688_v46  ;;  %v1308_v13 = vld [vmem:[#allocation4 + $0x58] sm:$0xf0]  ;;  %v1284_v14 = vld [vmem:[#allocation4 + $0x30] sm:$0xf0]  ;;  %v1290_v15 = vld [vmem:[#allocation4 + $0x28] sm:$0xf]  ;;  %v1716_v19 = vor.u32 %v1443_v5, %v1282_v4 }
  0x17   :  { %v1444_v18 = vld [vmem:[#allocation4 + $0x34] sm:$0xf0]  ;;  %v1718_v20 = vor.u32 %v1446_v11, %v1308_v13  ;;  %v1266_v22 = vld [vmem:[#allocation4] sm:$0xf]  ;;  %v1439_v23 = vld [vmem:[#allocation4 + $0xc] sm:$0xf0]  ;;  %v1722_v24 = vor.u32 %v1441_v10, %v1284_v14 }
  0x18   :  { %238 = vmatpush.bf16.msra.mxu0 %v1692_v53  ;;  %276 = vmatpush.bf16.msra.mxu3 %v1694_v54  ;;  %v1724_v25 = vor.u32 %v1444_v18, %v1290_v15  ;;  %v1437_v26 = vld [vmem:[#allocation4 + $0x4] sm:$0xf]  ;;  %v1442_v27 = vld [vmem:[#allocation4 + $0x2c] sm:$0xf]  ;;  %v1292_v29 = vld [vmem:[#allocation4 + $0x38] sm:$0xf0]  ;;  %v1728_v36 = vor.u32 %v1439_v23, %v1266_v22 }
  0x19   :  { %251 = vmatpush.bf16.msra.mxu1 %v1698_v57  ;;  %v1268_v30 = vld [vmem:[#allocation4 + $0x10] sm:$0xf0]  ;;  %v1274_v31 = vld [vmem:[#allocation4 + $0x8] sm:$0xf]  ;;  %v1440_v35 = vld [vmem:[#allocation4 + $0x14] sm:$0xf0]  ;;  %v1730_v37 = vor.u32 %v1442_v27, %v1292_v29 }
  0x1a   :  { %264 = vmatpush.bf16.msra.mxu2 %v1700_v58  ;;  %v1734_v38 = vor.u32 %v1437_v26, %v1268_v30  ;;  %v1736_v39 = vor.u32 %v1440_v35, %v1274_v31  ;;  %v1438_v40 = vld [vmem:[#allocation4 + $0xc] sm:$0xf]  ;;  %v1276_v43 = vld [vmem:[#allocation4 + $0x18] sm:$0xf0]  ;;  %v1630_v47 = vmov 0.0|0.0   ;;  %v67_v48 = vld [vmem:[%s2069_s0] sm:$0xff] }
  0x1b   :  { %v1742_v44 = vor.u32 %v1438_v40, %v1276_v43  ;;  %v69_v49 = vunpack.c.l.bf16 %v67_v48  ;;  %v70_v50 = vunpack.c.h.bf16 %v67_v48  ;;  %v68_v56 = vld [vmem:[%s2069_s0 + $0x8] sm:$0xff] }
  0x1c   :  { %239 = vmatpush.bf16.msra.mxu0 %v1704_v1  ;;  %277 = vmatpush.bf16.msra.mxu3 %v1706_v2  ;;  %v71_v62 = vunpack.c.l.bf16 %v68_v56  ;;  %v72_v22 = vunpack.c.h.bf16 %v68_v56 }
  0x1d   :  { %252 = vmatpush.bf16.msra.mxu1 %v1710_v6 }
  0x1e   :  { %265 = vmatpush.bf16.msra.mxu2 %v1712_v9 }
  0x20   :  { %240 = vmatpush.bf16.msra.mxu0 %v1716_v19  ;;  %278 = vmatpush.bf16.msra.mxu3 %v1718_v20 }
  0x21   :  { %253 = vmatpush.bf16.msra.mxu1 %v1722_v24 }
  0x22   :  { %266 = vmatpush.bf16.msra.mxu2 %v1724_v25 }
  0x24   :  { %241 = vmatpush.bf16.msra.mxu0 %v1728_v36  ;;  %279 = vmatpush.bf16.msra.mxu3 %v1730_v37 }
  0x25   :  { %254 = vmatpush.bf16.msra.mxu1 %v1734_v38 }
  0x26   :  { %267 = vmatpush.bf16.msra.mxu2 %v1736_v39 }
  0x27   :  { %242 = vmatmul.bf16.vlgmr.msra.gmra.mxu0 %v1630_v47 }
  0x28   :  { %362 = vmatpush.bf16.msrb.mxu0 %v1649_v3  ;;  %255 = vmatmul.bf16.vlgmr.msra.gmra.mxu1 %v1630_v47 }
  0x29   :  { %375 = vmatpush.bf16.msrb.mxu1 %v1651_v7  ;;  %268 = vmatmul.bf16.vlgmr.msra.gmra.mxu2 %v1630_v47 }
  0x2a   :  { %388 = vmatpush.bf16.msrb.mxu2 %v1653_v8  ;;  %280 = vmatpush.bf16.msra.mxu3 %v1742_v44 }
  0x2c   :  { %363 = vmatpush.bf16.msrb.mxu0 %v1656_v12 }
  0x2d   :  { %376 = vmatpush.bf16.msrb.mxu1 %v1660_v16  ;;  %281 = vmatmul.bf16.vlgmr.msra.gmra.mxu3 %v1630_v47 }
  0x2e   :  { %401 = vmatpush.bf16.msrb.mxu3 %v1664_v21  ;;  %389 = vmatpush.bf16.msrb.mxu2 %v1662_v17 }
  0x30   :  { %364 = vmatpush.bf16.msrb.mxu0 %v1668_v28 }
  0x31   :  { %377 = vmatpush.bf16.msrb.mxu1 %v1672_v32 }
  0x32   :  { %402 = vmatpush.bf16.msrb.mxu3 %v1676_v34  ;;  %390 = vmatpush.bf16.msrb.mxu2 %v1674_v33 }
  0x34   :  { %365 = vmatpush.bf16.msrb.mxu0 %v1680_v41 }
  0x35   :  { %378 = vmatpush.bf16.msrb.mxu1 %v1686_v45 }
  0x36   :  { %403 = vmatpush.bf16.msrb.mxu3 %v1682_v42  ;;  %391 = vmatpush.bf16.msrb.mxu2 %v1688_v46 }
  0x38   :  { %366 = vmatpush.bf16.msrb.mxu0 %v1692_v53 }
  0x39   :  { %379 = vmatpush.bf16.msrb.mxu1 %v1698_v57 }
  0x3a   :  { %404 = vmatpush.bf16.msrb.mxu3 %v1694_v54  ;;  %392 = vmatpush.bf16.msrb.mxu2 %v1700_v58 }
  0x3c   :  { %367 = vmatpush.bf16.msrb.mxu0 %v1704_v1 }
  0x3d   :  { %380 = vmatpush.bf16.msrb.mxu1 %v1710_v6 }
  0x3e   :  { %405 = vmatpush.bf16.msrb.mxu3 %v1706_v2  ;;  %393 = vmatpush.bf16.msrb.mxu2 %v1712_v9 }
  0x40   :  { %368 = vmatpush.bf16.msrb.mxu0 %v1716_v19 }
  0x41   :  { %381 = vmatpush.bf16.msrb.mxu1 %v1722_v24 }
  0x42   :  { %406 = vmatpush.bf16.msrb.mxu3 %v1718_v20  ;;  %394 = vmatpush.bf16.msrb.mxu2 %v1724_v25 }
  0x44   :  { %369 = vmatpush.bf16.msrb.mxu0 %v1728_v36 }
  0x45   :  { %382 = vmatpush.bf16.msrb.mxu1 %v1734_v38 }
  0x46   :  { %407 = vmatpush.bf16.msrb.mxu3 %v1730_v37  ;;  %395 = vmatpush.bf16.msrb.mxu2 %v1736_v39 }
  0x48   :  { %491 = vmatpush.bf16.msra.mxu0 %v1649_v3 }
  0x49   :  { %504 = vmatpush.bf16.msra.mxu1 %v1651_v7 }
  0x4a   :  { %517 = vmatpush.bf16.msra.mxu2 %v1653_v8  ;;  %408 = vmatpush.bf16.msrb.mxu3 %v1742_v44 }
  0x4c   :  { %492 = vmatpush.bf16.msra.mxu0 %v1656_v12 }
  0x4d   :  { %505 = vmatpush.bf16.msra.mxu1 %v1660_v16 }
  0x4e   :  { %530 = vmatpush.bf16.msra.mxu3 %v1664_v21  ;;  %518 = vmatpush.bf16.msra.mxu2 %v1662_v17 }
  0x50   :  { %493 = vmatpush.bf16.msra.mxu0 %v1668_v28 }
  0x51   :  { %506 = vmatpush.bf16.msra.mxu1 %v1672_v32 }
  0x52   :  { %531 = vmatpush.bf16.msra.mxu3 %v1676_v34  ;;  %519 = vmatpush.bf16.msra.mxu2 %v1674_v33 }
  0x54   :  { %494 = vmatpush.bf16.msra.mxu0 %v1680_v41 }
  0x55   :  { %507 = vmatpush.bf16.msra.mxu1 %v1686_v45 }
  0x56   :  { %532 = vmatpush.bf16.msra.mxu3 %v1682_v42  ;;  %520 = vmatpush.bf16.msra.mxu2 %v1688_v46 }
  0x58   :  { %495 = vmatpush.bf16.msra.mxu0 %v1692_v53 }
  0x59   :  { %508 = vmatpush.bf16.msra.mxu1 %v1698_v57 }
  0x5a   :  { %533 = vmatpush.bf16.msra.mxu3 %v1694_v54  ;;  %521 = vmatpush.bf16.msra.mxu2 %v1700_v58 }
  0x5c   :  { %496 = vmatpush.bf16.msra.mxu0 %v1704_v1 }
  0x5d   :  { %509 = vmatpush.bf16.msra.mxu1 %v1710_v6 }
  0x5e   :  { %534 = vmatpush.bf16.msra.mxu3 %v1706_v2  ;;  %522 = vmatpush.bf16.msra.mxu2 %v1712_v9 }
  0x60   :  { %497 = vmatpush.bf16.msra.mxu0 %v1716_v19 }
  0x61   :  { %510 = vmatpush.bf16.msra.mxu1 %v1722_v24 }
  0x62   :  { %535 = vmatpush.bf16.msra.mxu3 %v1718_v20  ;;  %523 = vmatpush.bf16.msra.mxu2 %v1724_v25 }
  0x64   :  { %498 = vmatpush.bf16.msra.mxu0 %v1728_v36 }
  0x65   :  { %511 = vmatpush.bf16.msra.mxu1 %v1734_v38 }
  0x66   :  { %536 = vmatpush.bf16.msra.mxu3 %v1730_v37  ;;  %524 = vmatpush.bf16.msra.mxu2 %v1736_v39 }
  0x6a   :  { %537 = vmatpush.bf16.msra.mxu3 %v1742_v44 }
  0xa4   :  { %v243_v51 = vpop.f32.mrf.mxu0 }
  0xa5   :  { %v286_v52 = vadd.f32 %v243_v51, %v69_v49  ;;  %v256_v55 = vpop.f32.mrf.mxu1 }
  0xa6   :  { %v287_v59 = vadd.f32 %v256_v55, %v70_v50 }
  0xa7   :  { %v1392_v60 = vmul.f32 -1.442695, %v286_v52 }
  0xa8   :  { %v1393_v61 = vmul.f32 -1.442695, %v287_v59 }
  0xa9   :  { %1473 = vpow2.f32 %v1392_v60 }
  0xaa   :  { %1475 = vpow2.f32 %v1393_v61 }
  0xac   :  { %v269_v63 = vpop.f32.mrf.mxu2  ;;  %v245_v4 = vpop.f32.mrf.mxu0 }
  0xad   :  { %v288_v0 = vadd.f32 %v269_v63, %v71_v62  ;;  %v258_v5 = vpop.f32.mrf.mxu1 }
  0xaf   :  { %v1394_v10 = vmul.f32 -1.442695, %v288_v0  ;;  %v1474_v11 = vpop.eup %1473 }
  0xb0   :  { %v282_v13 = vpop.f32.mrf.mxu3  ;;  %v1476_v14 = vpop.eup %1475  ;;  %v299_v15 = vadd.f32 1.0, %v1474_v11 }
  0xb1   :  { %1477 = vpow2.f32 %v1394_v10  ;;  %v300_v18 = vadd.f32 1.0, %v1476_v14  ;;  %v289_v27 = vadd.f32 %v282_v13, %v72_v22 }
  0xb2   :  { %1479 = vrcp.f32 %v299_v15  ;;  %v313_v49 = vand.u32 2147483648, %v299_v15  ;;  %v311_v52 = vand.u32 2147483647, %v299_v15  ;;  %vm307_vm2 = vweird.f32 %v299_v15 }
  0xb3   :  { %1481 = vrcp.f32 %v300_v18  ;;  %v328_v50 = vand.u32 2147483648, %v300_v18  ;;  %v326_v56 = vand.u32 2147483647, %v300_v18  ;;  %vm322_vm3 = vweird.f32 %v300_v18 }
  0xb4   :  { %v271_v23 = vpop.f32.mrf.mxu2  ;;  %v314_v63 = vor.u32 1.1754944e-38, %v313_v49  ;;  %vm312_vm5 = vcmp.eq.f32.partialorder %v311_v52, 8.507059e+37 }
  0xb5   :  { %v329_v4 = vor.u32 1.1754944e-38, %v328_v50  ;;  %vm327_vm7 = vcmp.eq.f32.partialorder %v326_v56, 8.507059e+37 }
  0xb7   :  { %v1478_v26 = vpop.eup %1477 }
  0xb8   :  { %v301_v29 = vadd.f32 1.0, %v1478_v26  ;;  %v284_v30 = vpop.f32.mrf.mxu3  ;;  %v1480_v31 = vpop.eup %1479 }
  0xb9   :  { %v1482_v35 = vpop.eup %1481  ;;  %v303_v40 = vmul.f32 %v1480_v31, %v299_v15  ;;  %vm308_vm0 = vweird.f32 %v1480_v31 }
  0xba   :  { %1483 = vrcp.f32 %v301_v29  ;;  %v318_v43 = vmul.f32 %v1482_v35, %v300_v18  ;;  %vm323_vm1 = vweird.f32 %v1482_v35  ;;  %vm309_vm4 = vmor %vm307_vm2, %vm308_vm0  ;;  %v343_v18 = vand.u32 2147483648, %v301_v29 }
  0xbb   :  { %1485 = vtanh.f32 %v289_v27  ;;  %v304_v47 = vsub.f32 1.0, %v303_v40  ;;  %vm324_vm6 = vmor %vm322_vm3, %vm323_vm1  ;;  %vm337_vm9 = vweird.f32 %v301_v29  ;;  %v341_v30 = vand.u32 2147483647, %v301_v29 }
  0xbc   :  { %v319_v48 = vsub.f32 1.0, %v318_v43  ;;  %v344_v40 = vor.u32 1.1754944e-38, %v343_v18 }
  0xbd   :  { %v305_v51 = vmul.f32 %v1480_v31, %v304_v47  ;;  %vm342_vm11 = vcmp.eq.f32.partialorder %v341_v30, 8.507059e+37 }
  0xbe   :  { %v320_v55 = vmul.f32 %v1482_v35, %v319_v48 }
  0xbf   :  { %v306_v60 = vadd.f32 %v1480_v31, %v305_v51 }
  0xc0   :  { %v1484_v59 = vpop.eup %1483  ;;  %v321_v0 = vadd.f32 %v1482_v35, %v320_v55 }
  0xc1   :  { %v1486_v61 = vpop.eup %1485  ;;  %v333_v62 = vmul.f32 %v1484_v59, %v301_v29  ;;  %v310_v5 = vsel %vm309_vm4, %v1480_v31, %v306_v60  ;;  %vm338_vm8 = vweird.f32 %v1484_v59  ;;  %v1395_v29 = vld [vmem:[%s2069_s0 + $0x10] sm:$0xff] }
  0xc2   :  { %v315_v11 = vsel %vm312_vm5, %v314_v63, %v310_v5  ;;  %v325_v13 = vsel %vm324_vm6, %v1482_v35, %v321_v0  ;;  %vm339_vm10 = vmor %vm337_vm9, %vm338_vm8  ;;  %v357_v49 = vunpack.c.l.bf16 %v1395_v29  ;;  %v358_v50 = vunpack.c.h.bf16 %v1395_v29 }
  0xc3   :  { %v334_v10 = vsub.f32 1.0, %v333_v62  ;;  %v330_v14 = vsel %vm327_vm7, %v329_v4, %v325_v13  ;;  %v349_v22 = vmul.f32 %v1486_v61, %v315_v11 }
  0xc4   :  { %v348_v26 = vmul.f32 0.0, %v330_v14 }
  0xc5   :  { %v335_v23 = vmul.f32 %v1484_v59, %v334_v10 }
  0xc6   :  { %v1815_v27 = vadd.f32 %v349_v22, %v348_v26 }
  0xc7   :  { %v336_v15 = vadd.f32 %v1484_v59, %v335_v23 }
  0xc8   :  { %1487 = vtanh.f32 %v1815_v27 }
  0xc9   :  { %v340_v31 = vsel %vm339_vm10, %v1484_v59, %v336_v15  ;;  %v1396_v59 = vld [vmem:[%s2069_s0 + $0x18] sm:$0xff] }
  0xca   :  { %v345_v35 = vsel %vm342_vm11, %v344_v40, %v340_v31  ;;  %v359_v62 = vunpack.c.l.bf16 %v1396_v59  ;;  %v360_v18 = vunpack.c.h.bf16 %v1396_v59 }
  0xce   :  { %v1488_v43 = vpop.eup %1487 }
  0xcf   :  { %v352_v47 = vmul.f32 %v1488_v43, %v345_v35 }
  0xd1   :  { %353 = vst [vmem:[%s2071_s2] sm:$0xff] %v352_v47  ;;  %v361_v48 = vpack.c.bf16 %v352_v47, %v352_v47 }
  0xd3   :  { %370 = vmatmul.bf16.vlgmr.msrb.gmra.mxu0 %v361_v48  ;;  %383 = vmatmul.bf16.vlgmr.msrb.gmra.mxu1 %v361_v48 }
  0xd4   :  { %396 = vmatmul.bf16.vlgmr.msrb.gmra.mxu2 %v361_v48  ;;  %409 = vmatmul.bf16.vlgmr.msrb.gmra.mxu3 %v361_v48 }
  0xd5   :  { %620 = vmatpush.bf16.msrb.mxu0 %v1649_v3  ;;  %633 = vmatpush.bf16.msrb.mxu1 %v1651_v7 }
  0xd6   :  { %646 = vmatpush.bf16.msrb.mxu2 %v1653_v8  ;;  %659 = vmatpush.bf16.msrb.mxu3 %v1664_v21 }
  0xd9   :  { %621 = vmatpush.bf16.msrb.mxu0 %v1656_v12  ;;  %634 = vmatpush.bf16.msrb.mxu1 %v1660_v16 }
  0xda   :  { %647 = vmatpush.bf16.msrb.mxu2 %v1662_v17  ;;  %660 = vmatpush.bf16.msrb.mxu3 %v1676_v34 }
  0xdd   :  { %622 = vmatpush.bf16.msrb.mxu0 %v1668_v28  ;;  %635 = vmatpush.bf16.msrb.mxu1 %v1672_v32 }
  0xde   :  { %648 = vmatpush.bf16.msrb.mxu2 %v1674_v33  ;;  %661 = vmatpush.bf16.msrb.mxu3 %v1682_v42 }
  0xe1   :  { %623 = vmatpush.bf16.msrb.mxu0 %v1680_v41  ;;  %636 = vmatpush.bf16.msrb.mxu1 %v1686_v45 }
  0xe2   :  { %649 = vmatpush.bf16.msrb.mxu2 %v1688_v46  ;;  %662 = vmatpush.bf16.msrb.mxu3 %v1694_v54 }
  0xe5   :  { %624 = vmatpush.bf16.msrb.mxu0 %v1692_v53  ;;  %637 = vmatpush.bf16.msrb.mxu1 %v1698_v57 }
  0xe6   :  { %650 = vmatpush.bf16.msrb.mxu2 %v1700_v58  ;;  %663 = vmatpush.bf16.msrb.mxu3 %v1706_v2 }
  0xe9   :  { %625 = vmatpush.bf16.msrb.mxu0 %v1704_v1  ;;  %638 = vmatpush.bf16.msrb.mxu1 %v1710_v6 }
  0xea   :  { %651 = vmatpush.bf16.msrb.mxu2 %v1712_v9  ;;  %664 = vmatpush.bf16.msrb.mxu3 %v1718_v20 }
  0xed   :  { %626 = vmatpush.bf16.msrb.mxu0 %v1716_v19  ;;  %639 = vmatpush.bf16.msrb.mxu1 %v1722_v24 }
  0xee   :  { %652 = vmatpush.bf16.msrb.mxu2 %v1724_v25  ;;  %665 = vmatpush.bf16.msrb.mxu3 %v1730_v37 }
  0xf1   :  { %627 = vmatpush.bf16.msrb.mxu0 %v1728_v36  ;;  %640 = vmatpush.bf16.msrb.mxu1 %v1734_v38 }
  0xf2   :  { %653 = vmatpush.bf16.msrb.mxu2 %v1736_v39  ;;  %666 = vmatpush.bf16.msrb.mxu3 %v1742_v44 }
 0x150   :  { %v371_v51 = vpop.f32.mrf.mxu0  ;;  %v384_v52 = vpop.f32.mrf.mxu1 }
 0x151   :  { %v414_v55 = vadd.f32 %v371_v51, %v357_v49  ;;  %v415_v56 = vadd.f32 %v384_v52, %v358_v50 }
 0x153   :  { %v1397_v60 = vmul.f32 -1.442695, %v414_v55  ;;  %v1398_v61 = vmul.f32 -1.442695, %v415_v56 }
 0x155   :  { %1489 = vpow2.f32 %v1397_v60 }
 0x156   :  { %1491 = vpow2.f32 %v1398_v61 }
 0x157   :  { %v397_v63 = vpop.f32.mrf.mxu2  ;;  %v410_v0 = vpop.f32.mrf.mxu3 }
 0x158   :  { %v416_v4 = vadd.f32 %v397_v63, %v359_v62  ;;  %v373_v5 = vpop.f32.mrf.mxu0  ;;  %v386_v10 = vpop.f32.mrf.mxu1  ;;  %v417_v43 = vadd.f32 %v410_v0, %v360_v18 }
 0x15a   :  { %v1399_v11 = vmul.f32 -1.442695, %v416_v4 }
 0x15b   :  { %v1490_v13 = vpop.eup %1489 }
 0x15c   :  { %v1492_v14 = vpop.eup %1491  ;;  %v427_v22 = vadd.f32 1.0, %v1490_v13  ;;  %1493 = vpow2.f32 %v1399_v11 }
 0x15d   :  { %v428_v23 = vadd.f32 1.0, %v1492_v14 }
 0x15e   :  { %1495 = vrcp.f32 %v427_v22  ;;  %v441_v50 = vand.u32 2147483648, %v427_v22  ;;  %v439_v55 = vand.u32 2147483647, %v427_v22  ;;  %vm435_vm14 = vweird.f32 %v427_v22 }
 0x15f   :  { %1497 = vrcp.f32 %v428_v23  ;;  %v399_v26 = vpop.f32.mrf.mxu2  ;;  %v412_v15 = vpop.f32.mrf.mxu3  ;;  %v456_v51 = vand.u32 2147483648, %v428_v23  ;;  %v454_v60 = vand.u32 2147483647, %v428_v23  ;;  %vm450_vm15 = vweird.f32 %v428_v23 }
 0x160   :  { %v442_v63 = vor.u32 1.1754944e-38, %v441_v50  ;;  %vm440_vm2 = vcmp.eq.f32.partialorder %v439_v55, 8.507059e+37 }
 0x161   :  { %v457_v4 = vor.u32 1.1754944e-38, %v456_v51  ;;  %vm455_vm3 = vcmp.eq.f32.partialorder %v454_v60, 8.507059e+37 }
 0x162   :  { %v1494_v30 = vpop.eup %1493 }
 0x163   :  { %v429_v31 = vadd.f32 1.0, %v1494_v30 }
 0x164   :  { %v1496_v40 = vpop.eup %1495 }
 0x165   :  { %v1498_v35 = vpop.eup %1497  ;;  %v431_v47 = vmul.f32 %v1496_v40, %v427_v22  ;;  %1499 = vrcp.f32 %v429_v31  ;;  %vm436_vm12 = vweird.f32 %v1496_v40  ;;  %vm465_vm5 = vweird.f32 %v429_v31 }
 0x166   :  { %v446_v48 = vmul.f32 %v1498_v35, %v428_v23  ;;  %1501 = vtanh.f32 %v417_v43  ;;  %vm451_vm13 = vweird.f32 %v1498_v35  ;;  %vm437_vm0 = vmor %vm435_vm14, %vm436_vm12  ;;  %v471_v43 = vand.u32 2147483648, %v429_v31 }
 0x167   :  { %v432_v29 = vsub.f32 1.0, %v431_v47  ;;  %vm452_vm1 = vmor %vm450_vm15, %vm451_vm13 }
 0x168   :  { %v447_v49 = vsub.f32 1.0, %v446_v48  ;;  %v472_v48 = vor.u32 1.1754944e-38, %v471_v43 }
 0x169   :  { %v433_v52 = vmul.f32 %v1496_v40, %v432_v29 }
 0x16a   :  { %v448_v56 = vmul.f32 %v1498_v35, %v447_v49 }
 0x16b   :  { %v1500_v59 = vpop.eup %1499  ;;  %v434_v61 = vadd.f32 %v1496_v40, %v433_v52 }
 0x16c   :  { %v461_v62 = vmul.f32 %v1500_v59, %v429_v31  ;;  %v449_v0 = vadd.f32 %v1498_v35, %v448_v56  ;;  %v1502_v10 = vpop.eup %1501  ;;  %vm466_vm4 = vweird.f32 %v1500_v59 }
 0x16d   :  { %v438_v5 = vsel %vm437_vm0, %v1496_v40, %v434_v61  ;;  %v469_v40 = vand.u32 2147483647, %v429_v31  ;;  %vm467_vm6 = vmor %vm465_vm5, %vm466_vm4  ;;  %v1401_v31 = vld [vmem:[%s2069_s0 + $0x20] sm:$0xff] }
 0x16e   :  { %v462_v11 = vsub.f32 1.0, %v461_v62  ;;  %v443_v13 = vsel %vm440_vm2, %v442_v63, %v438_v5  ;;  %v453_v14 = vsel %vm452_vm1, %v1498_v35, %v449_v0  ;;  %v486_v50 = vunpack.c.l.bf16 %v1401_v31 }
 0x16f   :  { %v458_v26 = vsel %vm455_vm3, %v457_v4, %v453_v14  ;;  %v477_v15 = vmul.f32 %v1502_v10, %v443_v13  ;;  %vm470_vm7 = vcmp.eq.f32.partialorder %v469_v40, 8.507059e+37  ;;  %v487_v51 = vunpack.c.h.bf16 %v1401_v31 }
 0x170   :  { %v463_v18 = vmul.f32 %v1500_v59, %v462_v11  ;;  %v476_v30 = vmul.f32 %v458_v26, %v1815_v27 }
 0x172   :  { %v1860_v22 = vadd.f32 %v477_v15, %v476_v30  ;;  %v464_v23 = vadd.f32 %v1500_v59, %v463_v18 }
 0x174   :  { %1503 = vtanh.f32 %v1860_v22  ;;  %v468_v47 = vsel %vm467_vm6, %v1500_v59, %v464_v23  ;;  %v1402_v59 = vld [vmem:[%s2069_s0 + $0x28] sm:$0xff] }
 0x175   :  { %v473_v29 = vsel %vm470_vm7, %v472_v48, %v468_v47  ;;  %v488_v63 = vunpack.c.l.bf16 %v1402_v59  ;;  %v489_v43 = vunpack.c.h.bf16 %v1402_v59 }
 0x17a   :  { %v1504_v35 = vpop.eup %1503 }
 0x17b   :  { %v480_v49 = vmul.f32 %v1504_v35, %v473_v29 }
 0x17d   :  { %1400 = vst [vmem:[%s2071_s2 + $0x8] sm:$0xff] %v480_v49  ;;  %v490_v27 = vpack.c.bf16 %v480_v49, %v480_v49 }
 0x17f   :  { %499 = vmatmul.bf16.vlgmr.msra.gmra.mxu0 %v490_v27  ;;  %512 = vmatmul.bf16.vlgmr.msra.gmra.mxu1 %v490_v27 }
 0x180   :  { %525 = vmatmul.bf16.vlgmr.msra.gmra.mxu2 %v490_v27  ;;  %538 = vmatmul.bf16.vlgmr.msra.gmra.mxu3 %v490_v27 }
 0x181   :  { %749 = vmatpush.bf16.msra.mxu0 %v1649_v3  ;;  %762 = vmatpush.bf16.msra.mxu1 %v1651_v7 }
 0x182   :  { %775 = vmatpush.bf16.msra.mxu2 %v1653_v8  ;;  %788 = vmatpush.bf16.msra.mxu3 %v1664_v21 }
 0x185   :  { %750 = vmatpush.bf16.msra.mxu0 %v1656_v12  ;;  %763 = vmatpush.bf16.msra.mxu1 %v1660_v16 }
 0x186   :  { %776 = vmatpush.bf16.msra.mxu2 %v1662_v17  ;;  %789 = vmatpush.bf16.msra.mxu3 %v1676_v34 }
 0x189   :  { %751 = vmatpush.bf16.msra.mxu0 %v1668_v28  ;;  %764 = vmatpush.bf16.msra.mxu1 %v1672_v32 }
 0x18a   :  { %777 = vmatpush.bf16.msra.mxu2 %v1674_v33  ;;  %790 = vmatpush.bf16.msra.mxu3 %v1682_v42 }
 0x18d   :  { %752 = vmatpush.bf16.msra.mxu0 %v1680_v41  ;;  %765 = vmatpush.bf16.msra.mxu1 %v1686_v45 }
 0x18e   :  { %778 = vmatpush.bf16.msra.mxu2 %v1688_v46  ;;  %791 = vmatpush.bf16.msra.mxu3 %v1694_v54 }
 0x191   :  { %753 = vmatpush.bf16.msra.mxu0 %v1692_v53  ;;  %766 = vmatpush.bf16.msra.mxu1 %v1698_v57 }
 0x192   :  { %779 = vmatpush.bf16.msra.mxu2 %v1700_v58  ;;  %792 = vmatpush.bf16.msra.mxu3 %v1706_v2 }
 0x195   :  { %754 = vmatpush.bf16.msra.mxu0 %v1704_v1  ;;  %767 = vmatpush.bf16.msra.mxu1 %v1710_v6 }
 0x196   :  { %780 = vmatpush.bf16.msra.mxu2 %v1712_v9  ;;  %793 = vmatpush.bf16.msra.mxu3 %v1718_v20 }
 0x199   :  { %755 = vmatpush.bf16.msra.mxu0 %v1716_v19  ;;  %768 = vmatpush.bf16.msra.mxu1 %v1722_v24 }
 0x19a   :  { %781 = vmatpush.bf16.msra.mxu2 %v1724_v25  ;;  %794 = vmatpush.bf16.msra.mxu3 %v1730_v37 }
 0x19d   :  { %756 = vmatpush.bf16.msra.mxu0 %v1728_v36  ;;  %769 = vmatpush.bf16.msra.mxu1 %v1734_v38 }
 0x19e   :  { %782 = vmatpush.bf16.msra.mxu2 %v1736_v39  ;;  %795 = vmatpush.bf16.msra.mxu3 %v1742_v44 }
 0x1fc   :  { %v500_v52 = vpop.f32.mrf.mxu0  ;;  %v513_v55 = vpop.f32.mrf.mxu1 }
 0x1fd   :  { %v543_v56 = vadd.f32 %v500_v52, %v486_v50  ;;  %v544_v60 = vadd.f32 %v513_v55, %v487_v51 }
 0x1ff   :  { %v1403_v61 = vmul.f32 -1.442695, %v543_v56  ;;  %v1404_v62 = vmul.f32 -1.442695, %v544_v60 }
 0x201   :  { %1505 = vpow2.f32 %v1403_v61 }
 0x202   :  { %1507 = vpow2.f32 %v1404_v62 }
 0x203   :  { %v526_v0 = vpop.f32.mrf.mxu2  ;;  %v539_v4 = vpop.f32.mrf.mxu3 }
 0x204   :  { %v545_v5 = vadd.f32 %v526_v0, %v488_v63  ;;  %v502_v10 = vpop.f32.mrf.mxu0  ;;  %v515_v11 = vpop.f32.mrf.mxu1  ;;  %v546_v35 = vadd.f32 %v539_v4, %v489_v43 }
 0x206   :  { %v1405_v13 = vmul.f32 -1.442695, %v545_v5 }
 0x207   :  { %v1506_v14 = vpop.eup %1505 }
 0x208   :  { %v1508_v26 = vpop.eup %1507  ;;  %v556_v15 = vadd.f32 1.0, %v1506_v14  ;;  %1509 = vpow2.f32 %v1405_v13 }
 0x209   :  { %v557_v18 = vadd.f32 1.0, %v1508_v26 }
 0x20a   :  { %1511 = vrcp.f32 %v556_v15  ;;  %v570_v51 = vand.u32 2147483648, %v556_v15  ;;  %v568_v56 = vand.u32 2147483647, %v556_v15  ;;  %vm564_vm10 = vweird.f32 %v556_v15 }
 0x20b   :  { %1513 = vrcp.f32 %v557_v18  ;;  %v528_v30 = vpop.f32.mrf.mxu2  ;;  %v541_v23 = vpop.f32.mrf.mxu3  ;;  %v585_v52 = vand.u32 2147483648, %v557_v18  ;;  %v583_v61 = vand.u32 2147483647, %v557_v18  ;;  %vm579_vm11 = vweird.f32 %v557_v18 }
 0x20c   :  { %v571_v0 = vor.u32 1.1754944e-38, %v570_v51  ;;  %vm569_vm14 = vcmp.eq.f32.partialorder %v568_v56, 8.507059e+37 }
 0x20d   :  { %v586_v5 = vor.u32 1.1754944e-38, %v585_v52  ;;  %vm584_vm15 = vcmp.eq.f32.partialorder %v583_v61, 8.507059e+37 }
 0x20e   :  { %v1510_v40 = vpop.eup %1509 }
 0x20f   :  { %v558_v47 = vadd.f32 1.0, %v1510_v40 }
 0x210   :  { %v1512_v48 = vpop.eup %1511 }
 0x211   :  { %v1514_v29 = vpop.eup %1513  ;;  %v560_v49 = vmul.f32 %v1512_v48, %v556_v15  ;;  %1515 = vrcp.f32 %v558_v47  ;;  %vm565_vm8 = vweird.f32 %v1512_v48  ;;  %vm594_vm1 = vweird.f32 %v558_v47 }
 0x212   :  { %v575_v27 = vmul.f32 %v1514_v29, %v557_v18  ;;  %1517 = vtanh.f32 %v546_v35  ;;  %vm580_vm9 = vweird.f32 %v1514_v29  ;;  %vm566_vm12 = vmor %vm564_vm10, %vm565_vm8  ;;  %v600_v35 = vand.u32 2147483648, %v558_v47 }
 0x213   :  { %v561_v31 = vsub.f32 1.0, %v560_v49  ;;  %vm581_vm13 = vmor %vm579_vm11, %vm580_vm9 }
 0x214   :  { %v576_v50 = vsub.f32 1.0, %v575_v27  ;;  %v601_v27 = vor.u32 1.1754944e-38, %v600_v35 }
 0x215   :  { %v562_v55 = vmul.f32 %v1512_v48, %v561_v31 }
 0x216   :  { %v577_v60 = vmul.f32 %v1514_v29, %v576_v50 }
 0x217   :  { %v1516_v59 = vpop.eup %1515  ;;  %v563_v62 = vadd.f32 %v1512_v48, %v562_v55 }
 0x218   :  { %v590_v63 = vmul.f32 %v1516_v59, %v558_v47  ;;  %v578_v4 = vadd.f32 %v1514_v29, %v577_v60  ;;  %v1518_v11 = vpop.eup %1517  ;;  %vm595_vm0 = vweird.f32 %v1516_v59 }
 0x219   :  { %v567_v10 = vsel %vm566_vm12, %v1512_v48, %v563_v62  ;;  %v598_v48 = vand.u32 2147483647, %v558_v47  ;;  %vm596_vm2 = vmor %vm594_vm1, %vm595_vm0  ;;  %v1407_v47 = vld [vmem:[%s2069_s0 + $0x30] sm:$0xff] }
 0x21a   :  { %v591_v13 = vsub.f32 1.0, %v590_v63  ;;  %v572_v14 = vsel %vm569_vm14, %v571_v0, %v567_v10  ;;  %v582_v26 = vsel %vm581_vm13, %v1514_v29, %v578_v4  ;;  %v615_v51 = vunpack.c.l.bf16 %v1407_v47 }
 0x21b   :  { %v587_v30 = vsel %vm584_vm15, %v586_v5, %v582_v26  ;;  %v606_v23 = vmul.f32 %v1518_v11, %v572_v14  ;;  %vm599_vm3 = vcmp.eq.f32.partialorder %v598_v48, 8.507059e+37  ;;  %v616_v52 = vunpack.c.h.bf16 %v1407_v47 }
 0x21c   :  { %v592_v43 = vmul.f32 %v1516_v59, %v591_v13  ;;  %v605_v40 = vmul.f32 %v587_v30, %v1860_v22 }
 0x21e   :  { %v1905_v15 = vadd.f32 %v606_v23, %v605_v40  ;;  %v593_v18 = vadd.f32 %v1516_v59, %v592_v43 }
 0x220   :  { %1519 = vtanh.f32 %v1905_v15  ;;  %v597_v49 = vsel %vm596_vm2, %v1516_v59, %v593_v18  ;;  %v1408_v59 = vld [vmem:[%s2069_s0 + $0x38] sm:$0xff] }
 0x221   :  { %v602_v31 = vsel %vm599_vm3, %v601_v27, %v597_v49  ;;  %v617_v0 = vunpack.c.l.bf16 %v1408_v59  ;;  %v618_v35 = vunpack.c.h.bf16 %v1408_v59 }
 0x226   :  { %v1520_v29 = vpop.eup %1519 }
 0x227   :  { %v609_v50 = vmul.f32 %v1520_v29, %v602_v31 }
 0x229   :  { %1406 = vst [vmem:[%s2071_s2 + $0x10] sm:$0xff] %v609_v50  ;;  %v619_v22 = vpack.c.bf16 %v609_v50, %v609_v50 }
 0x22b   :  { %628 = vmatmul.bf16.vlgmr.msrb.gmra.mxu0 %v619_v22  ;;  %641 = vmatmul.bf16.vlgmr.msrb.gmra.mxu1 %v619_v22 }
 0x22c   :  { %654 = vmatmul.bf16.vlgmr.msrb.gmra.mxu2 %v619_v22  ;;  %667 = vmatmul.bf16.vlgmr.msrb.gmra.mxu3 %v619_v22 }
 0x22d   :  { %878 = vmatpush.bf16.msrb.mxu0 %v1649_v3  ;;  %891 = vmatpush.bf16.msrb.mxu1 %v1651_v7 }
 0x22e   :  { %904 = vmatpush.bf16.msrb.mxu2 %v1653_v8  ;;  %917 = vmatpush.bf16.msrb.mxu3 %v1664_v21 }
 0x231   :  { %879 = vmatpush.bf16.msrb.mxu0 %v1656_v12  ;;  %892 = vmatpush.bf16.msrb.mxu1 %v1660_v16 }
 0x232   :  { %905 = vmatpush.bf16.msrb.mxu2 %v1662_v17  ;;  %918 = vmatpush.bf16.msrb.mxu3 %v1676_v34 }
 0x235   :  { %880 = vmatpush.bf16.msrb.mxu0 %v1668_v28  ;;  %893 = vmatpush.bf16.msrb.mxu1 %v1672_v32 }
 0x236   :  { %906 = vmatpush.bf16.msrb.mxu2 %v1674_v33  ;;  %919 = vmatpush.bf16.msrb.mxu3 %v1682_v42 }
 0x239   :  { %881 = vmatpush.bf16.msrb.mxu0 %v1680_v41  ;;  %894 = vmatpush.bf16.msrb.mxu1 %v1686_v45 }
 0x23a   :  { %907 = vmatpush.bf16.msrb.mxu2 %v1688_v46  ;;  %920 = vmatpush.bf16.msrb.mxu3 %v1694_v54 }
 0x23d   :  { %882 = vmatpush.bf16.msrb.mxu0 %v1692_v53  ;;  %895 = vmatpush.bf16.msrb.mxu1 %v1698_v57 }
 0x23e   :  { %908 = vmatpush.bf16.msrb.mxu2 %v1700_v58  ;;  %921 = vmatpush.bf16.msrb.mxu3 %v1706_v2 }
 0x241   :  { %883 = vmatpush.bf16.msrb.mxu0 %v1704_v1  ;;  %896 = vmatpush.bf16.msrb.mxu1 %v1710_v6 }
 0x242   :  { %909 = vmatpush.bf16.msrb.mxu2 %v1712_v9  ;;  %922 = vmatpush.bf16.msrb.mxu3 %v1718_v20 }
 0x245   :  { %884 = vmatpush.bf16.msrb.mxu0 %v1716_v19  ;;  %897 = vmatpush.bf16.msrb.mxu1 %v1722_v24 }
 0x246   :  { %910 = vmatpush.bf16.msrb.mxu2 %v1724_v25  ;;  %923 = vmatpush.bf16.msrb.mxu3 %v1730_v37 }
 0x249   :  { %885 = vmatpush.bf16.msrb.mxu0 %v1728_v36  ;;  %898 = vmatpush.bf16.msrb.mxu1 %v1734_v38 }
 0x24a   :  { %911 = vmatpush.bf16.msrb.mxu2 %v1736_v39  ;;  %924 = vmatpush.bf16.msrb.mxu3 %v1742_v44 }
 0x2a8   :  { %v629_v55 = vpop.f32.mrf.mxu0  ;;  %v642_v56 = vpop.f32.mrf.mxu1 }
 0x2a9   :  { %v672_v60 = vadd.f32 %v629_v55, %v615_v51  ;;  %v673_v61 = vadd.f32 %v642_v56, %v616_v52 }
 0x2ab   :  { %v1409_v62 = vmul.f32 -1.442695, %v672_v60  ;;  %v1410_v63 = vmul.f32 -1.442695, %v673_v61 }
 0x2ad   :  { %1521 = vpow2.f32 %v1409_v62 }
 0x2ae   :  { %1523 = vpow2.f32 %v1410_v63 }
 0x2af   :  { %v655_v4 = vpop.f32.mrf.mxu2  ;;  %v668_v5 = vpop.f32.mrf.mxu3 }
 0x2b0   :  { %v674_v10 = vadd.f32 %v655_v4, %v617_v0  ;;  %v631_v11 = vpop.f32.mrf.mxu0  ;;  %v644_v13 = vpop.f32.mrf.mxu1  ;;  %v675_v29 = vadd.f32 %v668_v5, %v618_v35 }
 0x2b2   :  { %v1411_v14 = vmul.f32 -1.442695, %v674_v10 }
 0x2b3   :  { %v1522_v26 = vpop.eup %1521 }
 0x2b4   :  { %v1524_v30 = vpop.eup %1523  ;;  %v685_v23 = vadd.f32 1.0, %v1522_v26  ;;  %1525 = vpow2.f32 %v1411_v14 }
 0x2b5   :  { %v686_v43 = vadd.f32 1.0, %v1524_v30 }
 0x2b6   :  { %1527 = vrcp.f32 %v685_v23  ;;  %v699_v52 = vand.u32 2147483648, %v685_v23  ;;  %v697_v60 = vand.u32 2147483647, %v685_v23  ;;  %vm693_vm6 = vweird.f32 %v685_v23 }
 0x2b7   :  { %1529 = vrcp.f32 %v686_v43  ;;  %v657_v40 = vpop.f32.mrf.mxu2  ;;  %v670_v18 = vpop.f32.mrf.mxu3  ;;  %v714_v55 = vand.u32 2147483648, %v686_v43  ;;  %v712_v62 = vand.u32 2147483647, %v686_v43  ;;  %vm708_vm7 = vweird.f32 %v686_v43 }
 0x2b8   :  { %v700_v4 = vor.u32 1.1754944e-38, %v699_v52  ;;  %vm698_vm10 = vcmp.eq.f32.partialorder %v697_v60, 8.507059e+37 }
 0x2b9   :  { %v715_v10 = vor.u32 1.1754944e-38, %v714_v55  ;;  %vm713_vm11 = vcmp.eq.f32.partialorder %v712_v62, 8.507059e+37 }
 0x2ba   :  { %v1526_v48 = vpop.eup %1525 }
 0x2bb   :  { %v687_v49 = vadd.f32 1.0, %v1526_v48 }
 0x2bc   :  { %v1528_v27 = vpop.eup %1527 }
 0x2bd   :  { %v1530_v31 = vpop.eup %1529  ;;  %v689_v50 = vmul.f32 %v1528_v27, %v685_v23  ;;  %1531 = vrcp.f32 %v687_v49  ;;  %vm694_vm4 = vweird.f32 %v1528_v27  ;;  %vm723_vm13 = vweird.f32 %v687_v49 }
 0x2be   :  { %v704_v22 = vmul.f32 %v1530_v31, %v686_v43  ;;  %1533 = vtanh.f32 %v675_v29  ;;  %vm709_vm5 = vweird.f32 %v1530_v31  ;;  %vm695_vm8 = vmor %vm693_vm6, %vm694_vm4  ;;  %v729_v29 = vand.u32 2147483648, %v687_v49 }
 0x2bf   :  { %v690_v47 = vsub.f32 1.0, %v689_v50  ;;  %vm710_vm9 = vmor %vm708_vm7, %vm709_vm5 }
 0x2c0   :  { %v705_v51 = vsub.f32 1.0, %v704_v22  ;;  %v730_v22 = vor.u32 1.1754944e-38, %v729_v29 }
 0x2c1   :  { %v691_v56 = vmul.f32 %v1528_v27, %v690_v47 }
 0x2c2   :  { %v706_v61 = vmul.f32 %v1530_v31, %v705_v51 }
 0x2c3   :  { %v1532_v59 = vpop.eup %1531  ;;  %v692_v63 = vadd.f32 %v1528_v27, %v691_v56 }
 0x2c4   :  { %v719_v0 = vmul.f32 %v1532_v59, %v687_v49  ;;  %v707_v5 = vadd.f32 %v1530_v31, %v706_v61  ;;  %v1534_v13 = vpop.eup %1533  ;;  %vm724_vm12 = vweird.f32 %v1532_v59 }
 0x2c5   :  { %v696_v11 = vsel %vm695_vm8, %v1528_v27, %v692_v63  ;;  %v727_v27 = vand.u32 2147483647, %v687_v49  ;;  %vm725_vm14 = vmor %vm723_vm13, %vm724_vm12  ;;  %v1413_v49 = vld [vmem:[%s2069_s0 + $0x40] sm:$0xff] }
 0x2c6   :  { %v720_v14 = vsub.f32 1.0, %v719_v0  ;;  %v701_v26 = vsel %vm698_vm10, %v700_v4, %v696_v11  ;;  %v711_v30 = vsel %vm710_vm9, %v1530_v31, %v707_v5  ;;  %v744_v52 = vunpack.c.l.bf16 %v1413_v49 }
 0x2c7   :  { %v716_v40 = vsel %vm713_vm11, %v715_v10, %v711_v30  ;;  %v735_v18 = vmul.f32 %v1534_v13, %v701_v26  ;;  %vm728_vm15 = vcmp.eq.f32.partialorder %v727_v27, 8.507059e+37  ;;  %v745_v55 = vunpack.c.h.bf16 %v1413_v49 }
 0x2c8   :  { %v721_v35 = vmul.f32 %v1532_v59, %v720_v14  ;;  %v734_v48 = vmul.f32 %v716_v40, %v1905_v15 }
 0x2ca   :  { %v1950_v23 = vadd.f32 %v735_v18, %v734_v48  ;;  %v722_v43 = vadd.f32 %v1532_v59, %v721_v35 }
 0x2cc   :  { %1535 = vtanh.f32 %v1950_v23  ;;  %v726_v50 = vsel %vm725_vm14, %v1532_v59, %v722_v43  ;;  %v1414_v59 = vld [vmem:[%s2069_s0 + $0x48] sm:$0xff] }
 0x2cd   :  { %v731_v47 = vsel %vm728_vm15, %v730_v22, %v726_v50  ;;  %v746_v4 = vunpack.c.l.bf16 %v1414_v59  ;;  %v747_v29 = vunpack.c.h.bf16 %v1414_v59 }
 0x2d2   :  { %v1536_v31 = vpop.eup %1535 }
 0x2d3   :  { %v738_v51 = vmul.f32 %v1536_v31, %v731_v47 }
 0x2d5   :  { %1412 = vst [vmem:[%s2071_s2 + $0x18] sm:$0xff] %v738_v51  ;;  %v748_v15 = vpack.c.bf16 %v738_v51, %v738_v51 }
 0x2d7   :  { %757 = vmatmul.bf16.vlgmr.msra.gmra.mxu0 %v748_v15  ;;  %770 = vmatmul.bf16.vlgmr.msra.gmra.mxu1 %v748_v15 }
 0x2d8   :  { %783 = vmatmul.bf16.vlgmr.msra.gmra.mxu2 %v748_v15  ;;  %796 = vmatmul.bf16.vlgmr.msra.gmra.mxu3 %v748_v15 }
 0x2d9   :  { %1007 = vmatpush.bf16.msra.mxu0 %v1649_v3  ;;  %1020 = vmatpush.bf16.msra.mxu1 %v1651_v7 }
 0x2da   :  { %1033 = vmatpush.bf16.msra.mxu2 %v1653_v8  ;;  %1046 = vmatpush.bf16.msra.mxu3 %v1664_v21 }
 0x2dd   :  { %1008 = vmatpush.bf16.msra.mxu0 %v1656_v12  ;;  %1021 = vmatpush.bf16.msra.mxu1 %v1660_v16 }
 0x2de   :  { %1034 = vmatpush.bf16.msra.mxu2 %v1662_v17  ;;  %1047 = vmatpush.bf16.msra.mxu3 %v1676_v34 }
 0x2e1   :  { %1009 = vmatpush.bf16.msra.mxu0 %v1668_v28  ;;  %1022 = vmatpush.bf16.msra.mxu1 %v1672_v32 }
 0x2e2   :  { %1035 = vmatpush.bf16.msra.mxu2 %v1674_v33  ;;  %1048 = vmatpush.bf16.msra.mxu3 %v1682_v42 }
 0x2e5   :  { %1010 = vmatpush.bf16.msra.mxu0 %v1680_v41  ;;  %1023 = vmatpush.bf16.msra.mxu1 %v1686_v45 }
 0x2e6   :  { %1036 = vmatpush.bf16.msra.mxu2 %v1688_v46  ;;  %1049 = vmatpush.bf16.msra.mxu3 %v1694_v54 }
 0x2e9   :  { %1011 = vmatpush.bf16.msra.mxu0 %v1692_v53  ;;  %1024 = vmatpush.bf16.msra.mxu1 %v1698_v57 }
 0x2ea   :  { %1037 = vmatpush.bf16.msra.mxu2 %v1700_v58  ;;  %1050 = vmatpush.bf16.msra.mxu3 %v1706_v2 }
 0x2ed   :  { %1012 = vmatpush.bf16.msra.mxu0 %v1704_v1  ;;  %1025 = vmatpush.bf16.msra.mxu1 %v1710_v6 }
 0x2ee   :  { %1038 = vmatpush.bf16.msra.mxu2 %v1712_v9  ;;  %1051 = vmatpush.bf16.msra.mxu3 %v1718_v20 }
 0x2f1   :  { %1013 = vmatpush.bf16.msra.mxu0 %v1716_v19  ;;  %1026 = vmatpush.bf16.msra.mxu1 %v1722_v24 }
 0x2f2   :  { %1039 = vmatpush.bf16.msra.mxu2 %v1724_v25  ;;  %1052 = vmatpush.bf16.msra.mxu3 %v1730_v37 }
 0x2f5   :  { %1014 = vmatpush.bf16.msra.mxu0 %v1728_v36  ;;  %1027 = vmatpush.bf16.msra.mxu1 %v1734_v38 }
 0x2f6   :  { %1040 = vmatpush.bf16.msra.mxu2 %v1736_v39  ;;  %1053 = vmatpush.bf16.msra.mxu3 %v1742_v44 }
 0x354   :  { %v758_v56 = vpop.f32.mrf.mxu0  ;;  %v771_v60 = vpop.f32.mrf.mxu1 }
 0x355   :  { %v801_v61 = vadd.f32 %v758_v56, %v744_v52  ;;  %v802_v62 = vadd.f32 %v771_v60, %v745_v55 }
 0x357   :  { %v1415_v63 = vmul.f32 -1.442695, %v801_v61  ;;  %v1416_v0 = vmul.f32 -1.442695, %v802_v62 }
 0x359   :  { %1537 = vpow2.f32 %v1415_v63 }
 0x35a   :  { %1539 = vpow2.f32 %v1416_v0 }
 0x35b   :  { %v784_v5 = vpop.f32.mrf.mxu2  ;;  %v797_v10 = vpop.f32.mrf.mxu3 }
 0x35c   :  { %v803_v11 = vadd.f32 %v784_v5, %v746_v4  ;;  %v760_v13 = vpop.f32.mrf.mxu0  ;;  %v773_v14 = vpop.f32.mrf.mxu1  ;;  %v804_v31 = vadd.f32 %v797_v10, %v747_v29 }
 0x35e   :  { %v1417_v26 = vmul.f32 -1.442695, %v803_v11 }
 0x35f   :  { %v1538_v30 = vpop.eup %1537 }
 0x360   :  { %v1540_v40 = vpop.eup %1539  ;;  %v814_v18 = vadd.f32 1.0, %v1538_v30  ;;  %1541 = vpow2.f32 %v1417_v26 }
 0x361   :  { %v815_v35 = vadd.f32 1.0, %v1540_v40 }
 0x362   :  { %1543 = vrcp.f32 %v814_v18  ;;  %v828_v55 = vand.u32 2147483648, %v814_v18  ;;  %v826_v61 = vand.u32 2147483647, %v814_v18  ;;  %vm822_vm2 = vweird.f32 %v814_v18 }
 0x363   :  { %1545 = vrcp.f32 %v815_v35  ;;  %v786_v48 = vpop.f32.mrf.mxu2  ;;  %v799_v43 = vpop.f32.mrf.mxu3  ;;  %v843_v56 = vand.u32 2147483648, %v815_v35  ;;  %v841_v63 = vand.u32 2147483647, %v815_v35  ;;  %vm837_vm3 = vweird.f32 %v815_v35 }
 0x364   :  { %v829_v5 = vor.u32 1.1754944e-38, %v828_v55  ;;  %vm827_vm6 = vcmp.eq.f32.partialorder %v826_v61, 8.507059e+37 }
 0x365   :  { %v844_v11 = vor.u32 1.1754944e-38, %v843_v56  ;;  %vm842_vm7 = vcmp.eq.f32.partialorder %v841_v63, 8.507059e+37 }
 0x366   :  { %v1542_v27 = vpop.eup %1541 }
 0x367   :  { %v816_v50 = vadd.f32 1.0, %v1542_v27 }
 0x368   :  { %v1544_v22 = vpop.eup %1543 }
 0x369   :  { %v1546_v47 = vpop.eup %1545  ;;  %v818_v51 = vmul.f32 %v1544_v22, %v814_v18  ;;  %1547 = vrcp.f32 %v816_v50  ;;  %vm823_vm0 = vweird.f32 %v1544_v22  ;;  %vm852_vm9 = vweird.f32 %v816_v50 }
 0x36a   :  { %v833_v15 = vmul.f32 %v1546_v47, %v815_v35  ;;  %1549 = vtanh.f32 %v804_v31  ;;  %vm838_vm1 = vweird.f32 %v1546_v47  ;;  %vm824_vm4 = vmor %vm822_vm2, %vm823_vm0  ;;  %v858_v31 = vand.u32 2147483648, %v816_v50 }
 0x36b   :  { %v819_v49 = vsub.f32 1.0, %v818_v51  ;;  %vm839_vm5 = vmor %vm837_vm3, %vm838_vm1 }
 0x36c   :  { %v834_v52 = vsub.f32 1.0, %v833_v15  ;;  %v859_v15 = vor.u32 1.1754944e-38, %v858_v31 }
 0x36d   :  { %v820_v60 = vmul.f32 %v1544_v22, %v819_v49 }
 0x36e   :  { %v835_v62 = vmul.f32 %v1546_v47, %v834_v52 }
 0x36f   :  { %v1548_v59 = vpop.eup %1547  ;;  %v821_v0 = vadd.f32 %v1544_v22, %v820_v60 }
 0x370   :  { %v848_v4 = vmul.f32 %v1548_v59, %v816_v50  ;;  %v836_v10 = vadd.f32 %v1546_v47, %v835_v62  ;;  %v1550_v14 = vpop.eup %1549  ;;  %vm853_vm8 = vweird.f32 %v1548_v59 }
 0x371   :  { %v825_v13 = vsel %vm824_vm4, %v1544_v22, %v821_v0  ;;  %v856_v22 = vand.u32 2147483647, %v816_v50  ;;  %vm854_vm10 = vmor %vm852_vm9, %vm853_vm8 }
 0x372   :  { %v849_v26 = vsub.f32 1.0, %v848_v4  ;;  %v830_v30 = vsel %vm827_vm6, %v829_v5, %v825_v13  ;;  %v840_v40 = vsel %vm839_vm5, %v1546_v47, %v836_v10 }
 0x373   :  { %v845_v48 = vsel %vm842_vm7, %v844_v11, %v840_v40  ;;  %v864_v43 = vmul.f32 %v1550_v14, %v830_v30  ;;  %vm857_vm11 = vcmp.eq.f32.partialorder %v856_v22, 8.507059e+37 }
 0x374   :  { %v850_v29 = vmul.f32 %v1548_v59, %v849_v26  ;;  %v863_v27 = vmul.f32 %v845_v48, %v1950_v23 }
 0x376   :  { %v1995_v18 = vadd.f32 %v864_v43, %v863_v27  ;;  %v851_v35 = vadd.f32 %v1548_v59, %v850_v29 }
 0x378   :  { %1551 = vtanh.f32 %v1995_v18  ;;  %v855_v51 = vsel %vm854_vm10, %v1548_v59, %v851_v35 }
 0x379   :  { %v860_v49 = vsel %vm857_vm11, %v859_v15, %v855_v51 }
 0x37e   :  { %v1552_v47 = vpop.eup %1551 }
 0x37f   :  { %v867_v52 = vmul.f32 %v1552_v47, %v860_v49 }
 0x381   :  { %1418 = vst [vmem:[%s2071_s2 + $0x20] sm:$0xff] %v867_v52  ;;  %v877_v23 = vpack.c.bf16 %v867_v52, %v867_v52 }
 0x383   :  { %886 = vmatmul.bf16.vlgmr.msrb.gmra.mxu0 %v877_v23  ;;  %899 = vmatmul.bf16.vlgmr.msrb.gmra.mxu1 %v877_v23 }
 0x384   :  { %912 = vmatmul.bf16.vlgmr.msrb.gmra.mxu2 %v877_v23  ;;  %925 = vmatmul.bf16.vlgmr.msrb.gmra.mxu3 %v877_v23 }
 0x385   :  { %1136 = vmatpush.bf16.msrb.mxu0 %v1649_v3  ;;  %1149 = vmatpush.bf16.msrb.mxu1 %v1651_v7  ;;  %v1419_v3 = vld [vmem:[%s2069_s0 + $0x50] sm:$0xff] }
 0x386   :  { %1162 = vmatpush.bf16.msrb.mxu2 %v1653_v8  ;;  %1175 = vmatpush.bf16.msrb.mxu3 %v1664_v21  ;;  %v873_v7 = vunpack.c.l.bf16 %v1419_v3  ;;  %v874_v8 = vunpack.c.h.bf16 %v1419_v3  ;;  %v1425_v3 = vld [vmem:[%s2069_s0 + $0x60] sm:$0xff] }
 0x389   :  { %1137 = vmatpush.bf16.msrb.mxu0 %v1656_v12  ;;  %1150 = vmatpush.bf16.msrb.mxu1 %v1660_v16 }
 0x38a   :  { %1163 = vmatpush.bf16.msrb.mxu2 %v1662_v17  ;;  %1176 = vmatpush.bf16.msrb.mxu3 %v1676_v34 }
 0x38d   :  { %1138 = vmatpush.bf16.msrb.mxu0 %v1668_v28  ;;  %1151 = vmatpush.bf16.msrb.mxu1 %v1672_v32  ;;  %v1420_v28 = vld [vmem:[%s2069_s0 + $0x58] sm:$0xff] }
 0x38e   :  { %1164 = vmatpush.bf16.msrb.mxu2 %v1674_v33  ;;  %1177 = vmatpush.bf16.msrb.mxu3 %v1682_v42  ;;  %v875_v34 = vunpack.c.l.bf16 %v1420_v28 }
 0x391   :  { %1139 = vmatpush.bf16.msrb.mxu0 %v1680_v41  ;;  %1152 = vmatpush.bf16.msrb.mxu1 %v1686_v45 }
 0x392   :  { %1165 = vmatpush.bf16.msrb.mxu2 %v1688_v46  ;;  %1178 = vmatpush.bf16.msrb.mxu3 %v1694_v54 }
 0x395   :  { %1140 = vmatpush.bf16.msrb.mxu0 %v1692_v53  ;;  %1153 = vmatpush.bf16.msrb.mxu1 %v1698_v57 }
 0x396   :  { %1166 = vmatpush.bf16.msrb.mxu2 %v1700_v58  ;;  %1179 = vmatpush.bf16.msrb.mxu3 %v1706_v2 }
 0x399   :  { %1141 = vmatpush.bf16.msrb.mxu0 %v1704_v1  ;;  %1154 = vmatpush.bf16.msrb.mxu1 %v1710_v6 }
 0x39a   :  { %1167 = vmatpush.bf16.msrb.mxu2 %v1712_v9  ;;  %1180 = vmatpush.bf16.msrb.mxu3 %v1718_v20 }
 0x39d   :  { %1142 = vmatpush.bf16.msrb.mxu0 %v1716_v19  ;;  %1155 = vmatpush.bf16.msrb.mxu1 %v1722_v24  ;;  %v876_v19 = vunpack.c.h.bf16 %v1420_v28  ;;  %v1426_v28 = vld [vmem:[%s2069_s0 + $0x68] sm:$0xff] }
 0x39e   :  { %1168 = vmatpush.bf16.msrb.mxu2 %v1724_v25  ;;  %1181 = vmatpush.bf16.msrb.mxu3 %v1730_v37 }
 0x3a1   :  { %1143 = vmatpush.bf16.msrb.mxu0 %v1728_v36  ;;  %1156 = vmatpush.bf16.msrb.mxu1 %v1734_v38 }
 0x3a2   :  { %1169 = vmatpush.bf16.msrb.mxu2 %v1736_v39  ;;  %1182 = vmatpush.bf16.msrb.mxu3 %v1742_v44 }
 0x400   :  { %v887_v12 = vpop.f32.mrf.mxu0  ;;  %v900_v16 = vpop.f32.mrf.mxu1 }
 0x401   :  { %v930_v17 = vadd.f32 %v887_v12, %v873_v7  ;;  %v931_v21 = vadd.f32 %v900_v16, %v874_v8  ;;  %v1002_v7 = vunpack.c.l.bf16 %v1425_v3  ;;  %v1003_v8 = vunpack.c.h.bf16 %v1425_v3  ;;  %v1431_v3 = vld [vmem:[%s2069_s0 + $0x70] sm:$0xff] }
 0x403   :  { %v1421_v32 = vmul.f32 -1.442695, %v930_v17  ;;  %v1422_v33 = vmul.f32 -1.442695, %v931_v21 }
 0x405   :  { %1553 = vpow2.f32 %v1421_v32 }
 0x406   :  { %1555 = vpow2.f32 %v1422_v33 }
 0x407   :  { %v913_v41 = vpop.f32.mrf.mxu2  ;;  %v926_v42 = vpop.f32.mrf.mxu3 }
 0x408   :  { %v932_v45 = vadd.f32 %v913_v41, %v875_v34  ;;  %v889_v46 = vpop.f32.mrf.mxu0  ;;  %v902_v53 = vpop.f32.mrf.mxu1  ;;  %v933_v36 = vadd.f32 %v926_v42, %v876_v19  ;;  %v1004_v34 = vunpack.c.l.bf16 %v1426_v28  ;;  %v1005_v19 = vunpack.c.h.bf16 %v1426_v28  ;;  %v1432_v28 = vld [vmem:[%s2069_s0 + $0x78] sm:$0xff] }
 0x40a   :  { %v1423_v54 = vmul.f32 -1.442695, %v932_v45 }
 0x40b   :  { %v1554_v57 = vpop.eup %1553 }
 0x40c   :  { %v1556_v58 = vpop.eup %1555  ;;  %v943_v1 = vadd.f32 1.0, %v1554_v57  ;;  %1557 = vpow2.f32 %v1423_v54 }
 0x40d   :  { %v944_v2 = vadd.f32 1.0, %v1556_v58 }
 0x40e   :  { %1559 = vrcp.f32 %v943_v1  ;;  %v957_v55 = vand.u32 2147483648, %v943_v1  ;;  %v955_v61 = vand.u32 2147483647, %v943_v1  ;;  %vm951_vm14 = vweird.f32 %v943_v1 }
 0x40f   :  { %1561 = vrcp.f32 %v944_v2  ;;  %v915_v6 = vpop.f32.mrf.mxu2  ;;  %v928_v9 = vpop.f32.mrf.mxu3  ;;  %v972_v56 = vand.u32 2147483648, %v944_v2  ;;  %v970_v63 = vand.u32 2147483647, %v944_v2  ;;  %vm966_vm15 = vweird.f32 %v944_v2 }
 0x410   :  { %v958_v5 = vor.u32 1.1754944e-38, %v957_v55  ;;  %vm956_vm2 = vcmp.eq.f32.partialorder %v955_v61, 8.507059e+37 }
 0x411   :  { %v973_v11 = vor.u32 1.1754944e-38, %v972_v56  ;;  %vm971_vm3 = vcmp.eq.f32.partialorder %v970_v63, 8.507059e+37 }
 0x412   :  { %v1558_v20 = vpop.eup %1557 }
 0x413   :  { %v945_v24 = vadd.f32 1.0, %v1558_v20 }
 0x414   :  { %v1560_v25 = vpop.eup %1559 }
 0x415   :  { %v1562_v37 = vpop.eup %1561  ;;  %v947_v38 = vmul.f32 %v1560_v25, %v943_v1  ;;  %1563 = vrcp.f32 %v945_v24  ;;  %vm952_vm12 = vweird.f32 %v1560_v25  ;;  %v987_v22 = vand.u32 2147483648, %v945_v24 }
 0x416   :  { %v962_v39 = vmul.f32 %v1562_v37, %v944_v2  ;;  %1565 = vtanh.f32 %v933_v36  ;;  %vm967_vm13 = vweird.f32 %v1562_v37  ;;  %vm953_vm0 = vmor %vm951_vm14, %vm952_vm12  ;;  %vm981_vm5 = vweird.f32 %v945_v24 }
 0x417   :  { %v948_v44 = vsub.f32 1.0, %v947_v38  ;;  %vm968_vm1 = vmor %vm966_vm15, %vm967_vm13  ;;  %v985_v51 = vand.u32 2147483647, %v945_v24  ;;  %v988_v47 = vor.u32 1.1754944e-38, %v987_v22 }
 0x418   :  { %v963_v50 = vsub.f32 1.0, %v962_v39 }
 0x419   :  { %v949_v60 = vmul.f32 %v1560_v25, %v948_v44  ;;  %vm986_vm7 = vcmp.eq.f32.partialorder %v985_v51, 8.507059e+37 }
 0x41a   :  { %v964_v62 = vmul.f32 %v1562_v37, %v963_v50 }
 0x41b   :  { %v1564_v59 = vpop.eup %1563  ;;  %v950_v0 = vadd.f32 %v1560_v25, %v949_v60 }
 0x41c   :  { %v977_v4 = vmul.f32 %v1564_v59, %v945_v24  ;;  %v965_v10 = vadd.f32 %v1562_v37, %v964_v62  ;;  %v1566_v14 = vpop.eup %1565  ;;  %vm982_vm4 = vweird.f32 %v1564_v59 }
 0x41d   :  { %v954_v13 = vsel %vm953_vm0, %v1560_v25, %v950_v0  ;;  %vm983_vm6 = vmor %vm981_vm5, %vm982_vm4 }
 0x41e   :  { %v978_v26 = vsub.f32 1.0, %v977_v4  ;;  %v959_v30 = vsel %vm956_vm2, %v958_v5, %v954_v13  ;;  %v969_v40 = vsel %vm968_vm1, %v1562_v37, %v965_v10 }
 0x41f   :  { %v974_v48 = vsel %vm971_vm3, %v973_v11, %v969_v40  ;;  %v993_v43 = vmul.f32 %v1566_v14, %v959_v30 }
 0x420   :  { %v979_v29 = vmul.f32 %v1564_v59, %v978_v26  ;;  %v992_v27 = vmul.f32 %v974_v48, %v1995_v18 }
 0x422   :  { %v2040_v35 = vadd.f32 %v993_v43, %v992_v27  ;;  %v980_v31 = vadd.f32 %v1564_v59, %v979_v29 }
 0x424   :  { %1567 = vtanh.f32 %v2040_v35  ;;  %v984_v15 = vsel %vm983_vm6, %v1564_v59, %v980_v31 }
 0x425   :  { %v989_v52 = vsel %vm986_vm7, %v988_v47, %v984_v15 }
 0x42a   :  { %v1568_v49 = vpop.eup %1567 }
 0x42b   :  { %v996_v23 = vmul.f32 %v1568_v49, %v989_v52 }
 0x42d   :  { %1424 = vst [vmem:[%s2071_s2 + $0x28] sm:$0xff] %v996_v23  ;;  %v1006_v18 = vpack.c.bf16 %v996_v23, %v996_v23 }
 0x42f   :  { %1015 = vmatmul.bf16.vlgmr.msra.gmra.mxu0 %v1006_v18  ;;  %1028 = vmatmul.bf16.vlgmr.msra.gmra.mxu1 %v1006_v18 }
 0x430   :  { %1041 = vmatmul.bf16.vlgmr.msra.gmra.mxu2 %v1006_v18  ;;  %1054 = vmatmul.bf16.vlgmr.msra.gmra.mxu3 %v1006_v18 }
 0x4ac   :  { %v1016_v12 = vpop.f32.mrf.mxu0  ;;  %v1029_v16 = vpop.f32.mrf.mxu1 }
 0x4ad   :  { %v1059_v17 = vadd.f32 %v1016_v12, %v1002_v7  ;;  %v1060_v21 = vadd.f32 %v1029_v16, %v1003_v8  ;;  %v1131_v7 = vunpack.c.l.bf16 %v1431_v3  ;;  %v1132_v8 = vunpack.c.h.bf16 %v1431_v3 }
 0x4af   :  { %v1427_v32 = vmul.f32 -1.442695, %v1059_v17  ;;  %v1428_v33 = vmul.f32 -1.442695, %v1060_v21 }
 0x4b1   :  { %1569 = vpow2.f32 %v1427_v32 }
 0x4b2   :  { %1571 = vpow2.f32 %v1428_v33 }
 0x4b3   :  { %v1042_v41 = vpop.f32.mrf.mxu2  ;;  %v1055_v42 = vpop.f32.mrf.mxu3 }
 0x4b4   :  { %v1061_v45 = vadd.f32 %v1042_v41, %v1004_v34  ;;  %v1018_v46 = vpop.f32.mrf.mxu0  ;;  %v1031_v53 = vpop.f32.mrf.mxu1  ;;  %v1062_v36 = vadd.f32 %v1055_v42, %v1005_v19  ;;  %v1133_v34 = vunpack.c.l.bf16 %v1432_v28  ;;  %v1134_v19 = vunpack.c.h.bf16 %v1432_v28 }
 0x4b6   :  { %v1429_v54 = vmul.f32 -1.442695, %v1061_v45 }
 0x4b7   :  { %v1570_v57 = vpop.eup %1569 }
 0x4b8   :  { %v1572_v58 = vpop.eup %1571  ;;  %v1072_v1 = vadd.f32 1.0, %v1570_v57  ;;  %1573 = vpow2.f32 %v1429_v54 }
 0x4b9   :  { %v1073_v2 = vadd.f32 1.0, %v1572_v58 }
 0x4ba   :  { %1575 = vrcp.f32 %v1072_v1  ;;  %v1086_v55 = vand.u32 2147483648, %v1072_v1  ;;  %v1084_v61 = vand.u32 2147483647, %v1072_v1  ;;  %vm1080_vm10 = vweird.f32 %v1072_v1 }
 0x4bb   :  { %1577 = vrcp.f32 %v1073_v2  ;;  %v1044_v6 = vpop.f32.mrf.mxu2  ;;  %v1057_v9 = vpop.f32.mrf.mxu3  ;;  %v1101_v56 = vand.u32 2147483648, %v1073_v2  ;;  %v1099_v63 = vand.u32 2147483647, %v1073_v2  ;;  %vm1095_vm11 = vweird.f32 %v1073_v2 }
 0x4bc   :  { %v1087_v5 = vor.u32 1.1754944e-38, %v1086_v55  ;;  %vm1085_vm14 = vcmp.eq.f32.partialorder %v1084_v61, 8.507059e+37 }
 0x4bd   :  { %v1102_v11 = vor.u32 1.1754944e-38, %v1101_v56  ;;  %vm1100_vm15 = vcmp.eq.f32.partialorder %v1099_v63, 8.507059e+37 }
 0x4be   :  { %v1574_v20 = vpop.eup %1573 }
 0x4bf   :  { %v1074_v24 = vadd.f32 1.0, %v1574_v20 }
 0x4c0   :  { %v1576_v25 = vpop.eup %1575 }
 0x4c1   :  { %v1578_v37 = vpop.eup %1577  ;;  %v1076_v38 = vmul.f32 %v1576_v25, %v1072_v1  ;;  %1579 = vrcp.f32 %v1074_v24  ;;  %vm1081_vm8 = vweird.f32 %v1576_v25  ;;  %v1116_v51 = vand.u32 2147483648, %v1074_v24 }
 0x4c2   :  { %v1091_v39 = vmul.f32 %v1578_v37, %v1073_v2  ;;  %1581 = vtanh.f32 %v1062_v36  ;;  %vm1096_vm9 = vweird.f32 %v1578_v37  ;;  %vm1082_vm12 = vmor %vm1080_vm10, %vm1081_vm8  ;;  %vm1110_vm1 = vweird.f32 %v1074_v24 }
 0x4c3   :  { %v1077_v44 = vsub.f32 1.0, %v1076_v38  ;;  %vm1097_vm13 = vmor %vm1095_vm11, %vm1096_vm9  ;;  %v1114_v15 = vand.u32 2147483647, %v1074_v24  ;;  %v1117_v49 = vor.u32 1.1754944e-38, %v1116_v51 }
 0x4c4   :  { %v1092_v50 = vsub.f32 1.0, %v1091_v39 }
 0x4c5   :  { %v1078_v60 = vmul.f32 %v1576_v25, %v1077_v44  ;;  %vm1115_vm3 = vcmp.eq.f32.partialorder %v1114_v15, 8.507059e+37 }
 0x4c6   :  { %v1093_v62 = vmul.f32 %v1578_v37, %v1092_v50 }
 0x4c7   :  { %v1580_v59 = vpop.eup %1579  ;;  %v1079_v0 = vadd.f32 %v1576_v25, %v1078_v60 }
 0x4c8   :  { %v1106_v4 = vmul.f32 %v1580_v59, %v1074_v24  ;;  %v1094_v10 = vadd.f32 %v1578_v37, %v1093_v62  ;;  %v1582_v14 = vpop.eup %1581  ;;  %vm1111_vm0 = vweird.f32 %v1580_v59 }
 0x4c9   :  { %v1083_v13 = vsel %vm1082_vm12, %v1576_v25, %v1079_v0  ;;  %vm1112_vm2 = vmor %vm1110_vm1, %vm1111_vm0 }
 0x4ca   :  { %v1107_v26 = vsub.f32 1.0, %v1106_v4  ;;  %v1088_v30 = vsel %vm1085_vm14, %v1087_v5, %v1083_v13  ;;  %v1098_v40 = vsel %vm1097_vm13, %v1578_v37, %v1094_v10 }
 0x4cb   :  { %v1103_v48 = vsel %vm1100_vm15, %v1102_v11, %v1098_v40  ;;  %v1122_v43 = vmul.f32 %v1582_v14, %v1088_v30 }
 0x4cc   :  { %v1108_v29 = vmul.f32 %v1580_v59, %v1107_v26  ;;  %v1121_v27 = vmul.f32 %v1103_v48, %v2040_v35 }
 0x4ce   :  { %v2053_v31 = vadd.f32 %v1122_v43, %v1121_v27  ;;  %v1109_v22 = vadd.f32 %v1580_v59, %v1108_v29 }
 0x4d0   :  { %1583 = vtanh.f32 %v2053_v31  ;;  %v1113_v47 = vsel %vm1112_vm2, %v1580_v59, %v1109_v22 }
 0x4d1   :  { %v1118_v23 = vsel %vm1115_vm3, %v1117_v49, %v1113_v47 }
 0x4d6   :  { %v1584_v52 = vpop.eup %1583 }
 0x4d7   :  { %v1125_v18 = vmul.f32 %v1584_v52, %v1118_v23 }
 0x4d9   :  { %1430 = vst [vmem:[%s2071_s2 + $0x30] sm:$0xff] %v1125_v18  ;;  %v1135_v35 = vpack.c.bf16 %v1125_v18, %v1125_v18 }
 0x4db   :  { %1144 = vmatmul.bf16.vlgmr.msrb.gmra.mxu0 %v1135_v35  ;;  %1157 = vmatmul.bf16.vlgmr.msrb.gmra.mxu1 %v1135_v35 }
 0x4dc   :  { %1170 = vmatmul.bf16.vlgmr.msrb.gmra.mxu2 %v1135_v35  ;;  %1183 = vmatmul.bf16.vlgmr.msrb.gmra.mxu3 %v1135_v35 }
 0x558   :  { %v1145_v12 = vpop.f32.mrf.mxu0  ;;  %v1158_v16 = vpop.f32.mrf.mxu1 }
 0x559   :  { %v1188_v17 = vadd.f32 %v1145_v12, %v1131_v7  ;;  %v1189_v21 = vadd.f32 %v1158_v16, %v1132_v8 }
 0x55b   :  { %v1433_v32 = vmul.f32 -1.442695, %v1188_v17  ;;  %v1434_v33 = vmul.f32 -1.442695, %v1189_v21 }
 0x55d   :  { %1585 = vpow2.f32 %v1433_v32 }
 0x55e   :  { %1587 = vpow2.f32 %v1434_v33 }
 0x55f   :  { %v1171_v41 = vpop.f32.mrf.mxu2  ;;  %v1184_v42 = vpop.f32.mrf.mxu3 }
 0x560   :  { %v1190_v45 = vadd.f32 %v1171_v41, %v1133_v34  ;;  %v1147_v46 = vpop.f32.mrf.mxu0  ;;  %v1160_v53 = vpop.f32.mrf.mxu1  ;;  %v1191_v36 = vadd.f32 %v1184_v42, %v1134_v19 }
 0x562   :  { %v1435_v54 = vmul.f32 -1.442695, %v1190_v45 }
 0x563   :  { %v1586_v57 = vpop.eup %1585 }
 0x564   :  { %v1588_v58 = vpop.eup %1587  ;;  %v1201_v1 = vadd.f32 1.0, %v1586_v57  ;;  %1589 = vpow2.f32 %v1435_v54 }
 0x565   :  { %v1202_v2 = vadd.f32 1.0, %v1588_v58 }
 0x566   :  { %1591 = vrcp.f32 %v1201_v1  ;;  %v1215_v55 = vand.u32 2147483648, %v1201_v1  ;;  %v1213_v61 = vand.u32 2147483647, %v1201_v1  ;;  %vm1209_vm6 = vweird.f32 %v1201_v1 }
 0x567   :  { %1593 = vrcp.f32 %v1202_v2  ;;  %v1173_v6 = vpop.f32.mrf.mxu2  ;;  %v1186_v9 = vpop.f32.mrf.mxu3  ;;  %v1230_v56 = vand.u32 2147483648, %v1202_v2  ;;  %v1228_v63 = vand.u32 2147483647, %v1202_v2  ;;  %vm1224_vm7 = vweird.f32 %v1202_v2 }
 0x568   :  { %v1216_v5 = vor.u32 1.1754944e-38, %v1215_v55  ;;  %vm1214_vm10 = vcmp.eq.f32.partialorder %v1213_v61, 8.507059e+37 }
 0x569   :  { %v1231_v11 = vor.u32 1.1754944e-38, %v1230_v56  ;;  %vm1229_vm11 = vcmp.eq.f32.partialorder %v1228_v63, 8.507059e+37 }
 0x56a   :  { %v1590_v20 = vpop.eup %1589 }
 0x56b   :  { %v1203_v24 = vadd.f32 1.0, %v1590_v20 }
 0x56c   :  { %v1592_v25 = vpop.eup %1591 }
 0x56d   :  { %v1594_v37 = vpop.eup %1593  ;;  %v1205_v38 = vmul.f32 %v1592_v25, %v1201_v1  ;;  %1595 = vrcp.f32 %v1203_v24  ;;  %vm1210_vm4 = vweird.f32 %v1592_v25  ;;  %v1245_v15 = vand.u32 2147483648, %v1203_v24 }
 0x56e   :  { %v1220_v39 = vmul.f32 %v1594_v37, %v1202_v2  ;;  %1597 = vtanh.f32 %v1191_v36  ;;  %vm1225_vm5 = vweird.f32 %v1594_v37  ;;  %vm1211_vm8 = vmor %vm1209_vm6, %vm1210_vm4  ;;  %vm1239_vm13 = vweird.f32 %v1203_v24 }
 0x56f   :  { %v1206_v44 = vsub.f32 1.0, %v1205_v38  ;;  %vm1226_vm9 = vmor %vm1224_vm7, %vm1225_vm5  ;;  %v1243_v47 = vand.u32 2147483647, %v1203_v24  ;;  %v1246_v52 = vor.u32 1.1754944e-38, %v1245_v15 }
 0x570   :  { %v1221_v50 = vsub.f32 1.0, %v1220_v39 }
 0x571   :  { %v1207_v60 = vmul.f32 %v1592_v25, %v1206_v44  ;;  %vm1244_vm15 = vcmp.eq.f32.partialorder %v1243_v47, 8.507059e+37 }
 0x572   :  { %v1222_v62 = vmul.f32 %v1594_v37, %v1221_v50 }
 0x573   :  { %v1596_v59 = vpop.eup %1595  ;;  %v1208_v0 = vadd.f32 %v1592_v25, %v1207_v60 }
 0x574   :  { %v1235_v4 = vmul.f32 %v1596_v59, %v1203_v24  ;;  %v1223_v10 = vadd.f32 %v1594_v37, %v1222_v62  ;;  %v1598_v14 = vpop.eup %1597  ;;  %vm1240_vm12 = vweird.f32 %v1596_v59 }
 0x575   :  { %v1212_v13 = vsel %vm1211_vm8, %v1592_v25, %v1208_v0  ;;  %vm1241_vm14 = vmor %vm1239_vm13, %vm1240_vm12 }
 0x576   :  { %v1236_v26 = vsub.f32 1.0, %v1235_v4  ;;  %v1217_v30 = vsel %vm1214_vm10, %v1216_v5, %v1212_v13  ;;  %v1227_v40 = vsel %vm1226_vm9, %v1594_v37, %v1223_v10 }
 0x577   :  { %v1232_v48 = vsel %vm1229_vm11, %v1231_v11, %v1227_v40  ;;  %v1251_v43 = vmul.f32 %v1598_v14, %v1217_v30 }
 0x578   :  { %v1237_v29 = vmul.f32 %v1596_v59, %v1236_v26  ;;  %v1250_v27 = vmul.f32 %v1232_v48, %v2053_v31 }
 0x57a   :  { %v1252_v22 = vadd.f32 %v1251_v43, %v1250_v27  ;;  %v1238_v51 = vadd.f32 %v1596_v59, %v1237_v29 }
 0x57c   :  { %1599 = vtanh.f32 %v1252_v22  ;;  %v1242_v49 = vsel %vm1241_vm14, %v1596_v59, %v1238_v51 }
 0x57d   :  { %v1247_v18 = vsel %vm1244_vm15, %v1246_v52, %v1242_v49 }
 0x582   :  { %v1600_v23 = vpop.eup %1599 }
 0x583   :  { %v1254_v35 = vmul.f32 %v1600_v23, %v1247_v18 }
 0x585   :  { %1436 = vst [vmem:[%s2071_s2 + $0x38] sm:$0xff] %v1254_v35 }
 0x586   :  { %1263 = vsyncpa [#allocation5], 1 }

</bundles_post_ra>
